<compile_context>
chip_gen: v7x
topology: tpu7x:2x2x1
jax: 0.10.0
libtpu: 0.0.40
codegen_flags: <defaults>
</compile_context>

<pallas_src>
import functools

import jax
import jax.numpy as jnp
from jax.experimental import pallas as pl
from jax.experimental.pallas import tpu as pltpu

# Problem sizes (small, tile-friendly).
B, T = 8, 8          # batch, sequence length
I0, I1 = 16, 8       # per-layer input sizes
H = 32               # hidden size (same for both layers)
L = 2                # number of layers


def _hmgru_kernel(x0_ref, x1_ref, coef_ref,
                  w0x_ref, b0_ref, r0_ref, u0g_ref,
                  w1x_ref, b1_ref, r1_ref, u1g_ref,
                  out_ref):
    f32 = jnp.float32
    Tk, Bk, _ = out_ref.shape          # (T, B, 2H)
    Hk = u0g_ref.shape[0]

    # Hoist all (tiny) weight loads out of the time loop.
    r0 = r0_ref[...]                   # (2H, 3H): [W_top(z|r|g) ; Uz|Ur|0], layer 0
    u0g = u0g_ref[...]                 # (H, H)
    r1 = r1_ref[...]                   # (2H, 3H): [W_bottom(z|r|g) ; Uz|Ur|0], layer 1
    u1g = u1g_ref[...]                 # (H, H)

    # Input projections off the serial chain: one big dot per layer covering all
    # time steps (rows are step-major: row t*B + b).
    xp0 = jnp.dot(x0_ref[...], w0x_ref[...], preferred_element_type=f32) + b0_ref[...]
    xp1 = jnp.dot(x1_ref[...], w1x_ref[...], preferred_element_type=f32) + b1_ref[...]

    h0 = jnp.zeros((Bk, Hk), f32)      # layer-0 hidden state (previous step)
    h1 = jnp.zeros((Bk, Hk), f32)      # layer-1 hidden state (previous step)

    # Static (fully unrolled) recurrence over time; every index below is static.
    for t in range(Tk):
        # Pre-broadcast (B, H) gating coefficient tiles -> plain vector loads.
        d0 = coef_ref[t, 0]            # d_self layer 0 (prev-step boundary)
        omd0 = coef_ref[t, 1]          # 1 - d0
        db1 = coef_ref[t, 2]           # d_bottom layer 1 (= dx layer 0 at t)
        ch1 = coef_ref[t, 3]           # (1-d1)(1-db1)
        cz1 = coef_ref[t, 4]           # (1-d1)*db1
        cg1 = coef_ref[t, 5]           # d1 + (1-d1)*db1

        # ---------------- layer 0 (bottom_size = 1 -> bottom term is exactly 0) --
        # Fused recurrent block dot: [d0*h_top | h0] @ [[W_top]; [Uz|Ur|0]].
        lhs0 = jnp.concatenate([d0 * h1, h0], axis=-1)                     # (B, 2H)
        pre0 = xp0[t * Bk:(t + 1) * Bk, :] + jnp.dot(
            lhs0, r0, preferred_element_type=f32)                          # (B, 3H)
        z0 = jax.nn.sigmoid(pre0[:, :Hk])
        rg0 = jax.nn.sigmoid(pre0[:, Hk:2 * Hk])
        g0 = jnp.tanh(pre0[:, 2 * Hk:]
                      + jnp.dot(rg0 * h0, u0g, preferred_element_type=f32))
        # db0 == 1 always => h0_new = (1-z)*g + (1-d0)*z*h0   (exact for d0 in {0,1})
        h0 = (1.0 - z0) * g0 + omd0 * (z0 * h0)

        # ---------------- layer 1 (last layer -> no top term) --------------------
        lhs1 = jnp.concatenate([db1 * h0, h1], axis=-1)                    # (B, 2H)
        pre1 = xp1[t * Bk:(t + 1) * Bk, :] + jnp.dot(
            lhs1, r1, preferred_element_type=f32)                          # (B, 3H)
        z1 = jax.nn.sigmoid(pre1[:, :Hk])
        rg1 = jax.nn.sigmoid(pre1[:, Hk:2 * Hk])
        g1 = jnp.tanh(pre1[:, 2 * Hk:]
                      + jnp.dot(rg1 * h1, u1g, preferred_element_type=f32))
        # COPY/UPDATE/FLUSH folded: h1_new = (ch1 + cz1*z)*h1 + cg1*(1-z)*g
        h1 = (ch1 + cz1 * z1) * h1 + cg1 * ((1.0 - z1) * g1)

        # One dense (B, 2H) store per step (step-major layout).
        out_ref[t, :, :] = jnp.concatenate([h0, h1], axis=-1)


def fuse_hmgru_params(params):
    """One-off weight fusion (done once at init, off the per-call hot path)."""
    win0, u0, wtop0, b0, win1, wbot1, u1, b1 = params
    Hn = u0.shape[-1]
    zero = jnp.zeros((Hn, Hn), jnp.float32)

    w0x = jnp.concatenate([win0[0], win0[1], win0[2]], axis=1)            # (I0, 3H)
    b0a = jnp.concatenate([b0[0], b0[1], b0[2]], axis=1)                  # (1, 3H)
    r0 = jnp.concatenate(
        [jnp.concatenate([wtop0[0], wtop0[1], wtop0[2]], axis=1),         # h_top rows
         jnp.concatenate([u0[0], u0[1], zero], axis=1)], axis=0)          # h rows (z|r|0)
    u0g = u0[2]                                                           # (H, H)

    w1x = jnp.concatenate([win1[0], win1[1], win1[2]], axis=1)            # (I1, 3H)
    b1a = jnp.concatenate([b1[0], b1[1], b1[2]], axis=1)                  # (1, 3H)
    r1 = jnp.concatenate(
        [jnp.concatenate([wbot1[0], wbot1[1], wbot1[2]], axis=1),         # h_bottom rows
         jnp.concatenate([u1[0], u1[1], zero], axis=1)], axis=0)          # h rows (z|r|0)
    u1g = u1[2]                                                           # (H, H)
    return (w0x, b0a, r0, u0g, w1x, b1a, r1, u1g)


@jax.jit
def hmgru_pallas(x0, x1, dx, fused):
    """x0 (B,T,I0), x1 (B,T,I1), dx (B, L, T) with 0/1 known boundaries."""
    w0x, b0a, r0, u0g, w1x, b1a, r1, u1g = fused
    f32 = jnp.float32
    Bs, Ts = x0.shape[0], x0.shape[1]
    Hn = u0g.shape[0]

    # Step-major activations: one contiguous (B, .) tile per time step.
    x0f = jnp.transpose(x0, (1, 0, 2)).reshape(Ts * Bs, x0.shape[2]).astype(f32)
    x1f = jnp.transpose(x1, (1, 0, 2)).reshape(Ts * Bs, x1.shape[2]).astype(f32)

    # ---- precompute COPY/UPDATE/FLUSH gating coefficients per (t, b) -----------
    # d_self[t] = dx[:, l, t-1] (zero at t == 0); d_bottom for layer 1 = dx[:, 0, t].
    dxf = dx.astype(f32)                                                  # (B, L, T)
    d_prev = jnp.pad(dxf[:, :, :-1], ((0, 0), (0, 0), (1, 0)))            # shift by 1
    d0 = d_prev[:, 0, :].T                                                # (T, B)
    d1 = d_prev[:, 1, :].T
    db1 = dxf[:, 0, :].T
    ch1 = (1.0 - d1) * (1.0 - db1)
    cz1 = (1.0 - d1) * db1
    cg1 = d1 + cz1
    coef = jnp.stack([d0, 1.0 - d0, db1, ch1, cz1, cg1], axis=1)          # (T, 6, B)
    coef = jnp.broadcast_to(coef[..., None], (Ts, 6, Bs, Hn))             # (T, 6, B, H)

    vmem = functools.partial(pl.BlockSpec, memory_space=pltpu.MemorySpace.VMEM)
    # Single invocation, no grid: every operand / output is fully VMEM-resident.
    out_tb = pl.pallas_call(
        _hmgru_kernel,
        out_shape=jax.ShapeDtypeStruct((Ts, Bs, 2 * Hn), f32),
        in_specs=[vmem() for _ in range(11)],
        out_specs=vmem(),
    )(x0f, x1f, coef, w0x, b0a, r0, u0g, w1x, b1a, r1, u1g)

    out_bt = jnp.transpose(out_tb, (1, 0, 2))                             # (B, T, 2H)
    output = [out_bt[:, :, :Hn], out_bt[:, :, Hn:]]
    hx_out = [out_tb[-1, :, :Hn], out_tb[-1, :, Hn:]]
    # Boundaries known for every layer -> hard/soft boundary outputs are zeros
    # (matches torch.stack(...).squeeze() for B, L, T > 1).
    ds = jnp.zeros((Bs, dx.shape[1], Ts), f32)
    ds_soft = jnp.zeros((Bs, dx.shape[1], Ts), f32)
    return output, hx_out, ds, ds_soft


def hmgru_ref(xs, dx, params):
    """Pure-JAX reference mirroring the PyTorch forward, for validation."""
    x0, x1 = xs
    win0, u0, wtop0, b0, win1, wbot1, u1, b1 = params
    Bs, Ts = x0.shape[0], x0.shape[1]
    h0 = jnp.zeros((Bs, H), jnp.float32)
    h1 = jnp.zeros((Bs, H), jnp.float32)
    outs0, outs1 = [], []
    for t in range(Ts):
        h1_prev = h1
        # layer 0
        d0 = jnp.zeros((Bs, 1), jnp.float32) if t == 0 else dx[:, 0, t - 1:t]
        zt = d0 * (h1_prev @ wtop0[0]); rt = d0 * (h1_prev @ wtop0[1]); gt = d0 * (h1_prev @ wtop0[2])
        z = jax.nn.sigmoid(x0[:, t] @ win0[0] + h0 @ u0[0] + zt + b0[0])
        r = jax.nn.sigmoid(x0[:, t] @ win0[1] + h0 @ u0[1] + rt + b0[1])
        g = jnp.tanh(x0[:, t] @ win0[2] + (r * h0) @ u0[2] + gt + b0[2])
        db = 1.0
        h0 = (1 - d0) * (1 - db) * h0 + d0 * (1 - z) * g + (1 - d0) * db * (z * h0 + (1 - z) * g)
        # layer 1
        d1 = jnp.zeros((Bs, 1), jnp.float32) if t == 0 else dx[:, 1, t - 1:t]
        db1 = dx[:, 0, t:t + 1]
        zb = db1 * (h0 @ wbot1[0]); rb = db1 * (h0 @ wbot1[1]); gb = db1 * (h0 @ wbot1[2])
        z = jax.nn.sigmoid(x1[:, t] @ win1[0] + zb + h1_prev @ u1[0] + b1[0])
        r = jax.nn.sigmoid(x1[:, t] @ win1[1] + rb + h1_prev @ u1[1] + b1[1])
        g = jnp.tanh(x1[:, t] @ win1[2] + gb + (r * h1_prev) @ u1[2] + b1[2])
        h1 = (1 - d1) * (1 - db1) * h1_prev + d1 * (1 - z) * g + (1 - d1) * db1 * (z * h1_prev + (1 - z) * g)
        outs0.append(h0)
        outs1.append(h1)
    return jnp.stack(outs0, axis=1), jnp.stack(outs1, axis=1)


if __name__ == "__main__":
    key = jax.random.PRNGKey(0)
    ks = jax.random.split(key, 11)
    stddev = 1.0 / (H ** 0.5)   # PyTorch-style init: uniform(-1/sqrt(H), 1/sqrt(H))

    def unif(k, shape):
        return jax.random.uniform(k, shape, jnp.float32, -stddev, stddev)

    # Gate weights stacked on a leading axis: index 0 -> z, 1 -> r, 2 -> g.
    win0 = unif(ks[0], (3, I0, H))    # Wz/Wr/Wg_input, layer 0
    u0 = unif(ks[1], (3, H, H))       # Uz/Ur/Ug, layer 0
    wtop0 = unif(ks[2], (3, H, H))    # Wz/Wr/Wg_top, layer 0 (top_size = H)
    b0 = unif(ks[3], (3, 1, H))       # bias_z/r/g, layer 0
    win1 = unif(ks[4], (3, I1, H))    # Wz/Wr/Wg_input, layer 1
    wbot1 = unif(ks[5], (3, H, H))    # Wz/Wr/Wg_bottom, layer 1 (bottom_size = H)
    u1 = unif(ks[6], (3, H, H))       # Uz/Ur/Ug, layer 1
    b1 = unif(ks[7], (3, 1, H))       # bias_z/r/g, layer 1
    params = (win0, u0, wtop0, b0, win1, wbot1, u1, b1)
    # TODO(synk): W_boundary / bias_boundary and the straight-through / gumbel-sigmoid
    # boundary estimators are unused because all boundaries are known in this config.

    x0 = jax.random.normal(ks[8], (B, T, I0), jnp.float32)
    x1 = jax.random.normal(ks[9], (B, T, I1), jnp.float32)
    dx = jax.random.bernoulli(ks[10], 0.3, (B, L, T)).astype(jnp.float32)

    fused = fuse_hmgru_params(params)          # one-off, off the per-call hot path
    output, hx_out, ds, ds_soft = hmgru_pallas(x0, x1, dx, fused)
    jax.block_until_ready(output)

    ref0, ref1 = hmgru_ref([x0, x1], dx, params)
    assert jnp.allclose(output[0], ref0, atol=1e-5, rtol=1e-5), "layer 0 mismatch"
    assert jnp.allclose(output[1], ref1, atol=1e-5, rtol=1e-5), "layer 1 mismatch"
    assert jnp.allclose(hx_out[0], ref0[:, -1, :], atol=1e-5, rtol=1e-5)
    assert jnp.allclose(hx_out[1], ref1[:, -1, :], atol=1e-5, rtol=1e-5)
    assert ds.shape == (B, L, T) and ds_soft.shape == (B, L, T)

    print("KERNEL_OK")
</pallas_src>

<mosaic_0001>
module attributes {stable_mosaic.version = 11 : i64} {
  func.func @_hmgru_kernel(%arg0: memref<64x16xf32, #tpu.memory_space<vmem>>, %arg1: memref<64x8xf32, #tpu.memory_space<vmem>>, %arg2: memref<8x6x8x32xf32, #tpu.memory_space<vmem>>, %arg3: memref<16x96xf32, #tpu.memory_space<vmem>>, %arg4: memref<1x96xf32, #tpu.memory_space<vmem>>, %arg5: memref<64x96xf32, #tpu.memory_space<vmem>>, %arg6: memref<32x32xf32, #tpu.memory_space<vmem>>, %arg7: memref<8x96xf32, #tpu.memory_space<vmem>>, %arg8: memref<1x96xf32, #tpu.memory_space<vmem>>, %arg9: memref<64x96xf32, #tpu.memory_space<vmem>>, %arg10: memref<32x32xf32, #tpu.memory_space<vmem>>, %arg11: memref<8x8x64xf32, #tpu.memory_space<vmem>>) attributes {dimension_semantics = [], scalar_prefetch = 0 : i64, scratch_operands = 0 : i64, tpu.core_type = #tpu.core_type<tc>} {
    %c0 = arith.constant 0 : index
    %c0_0 = arith.constant 0 : index
    %0 = vector.load %arg5[%c0, %c0_0] : memref<64x96xf32, #tpu.memory_space<vmem>>, vector<64x96xf32>
    %c0_1 = arith.constant 0 : index
    %c0_2 = arith.constant 0 : index
    %1 = vector.load %arg6[%c0_1, %c0_2] : memref<32x32xf32, #tpu.memory_space<vmem>>, vector<32x32xf32>
    %c0_3 = arith.constant 0 : index
    %c0_4 = arith.constant 0 : index
    %2 = vector.load %arg9[%c0_3, %c0_4] : memref<64x96xf32, #tpu.memory_space<vmem>>, vector<64x96xf32>
    %c0_5 = arith.constant 0 : index
    %c0_6 = arith.constant 0 : index
    %3 = vector.load %arg10[%c0_5, %c0_6] : memref<32x32xf32, #tpu.memory_space<vmem>>, vector<32x32xf32>
    %c0_7 = arith.constant 0 : index
    %c0_8 = arith.constant 0 : index
    %4 = vector.load %arg0[%c0_7, %c0_8] : memref<64x16xf32, #tpu.memory_space<vmem>>, vector<64x16xf32>
    %c0_9 = arith.constant 0 : index
    %c0_10 = arith.constant 0 : index
    %5 = vector.load %arg3[%c0_9, %c0_10] : memref<16x96xf32, #tpu.memory_space<vmem>>, vector<16x96xf32>
    %cst = arith.constant dense<0.000000e+00> : vector<64x96xf32>
    %6 = tpu.matmul %4, %5, %cst {dimension_numbers = #tpu.dot_dimension_numbers<[1], [0], [0], [1], [0, 0, 1, 1], [], []>} : vector<64x16xf32>, vector<16x96xf32>, vector<64x96xf32> -> vector<64x96xf32>
    %c0_11 = arith.constant 0 : index
    %c0_12 = arith.constant 0 : index
    %7 = vector.load %arg4[%c0_11, %c0_12] : memref<1x96xf32, #tpu.memory_space<vmem>>, vector<1x96xf32>
    %8 = vector.broadcast %7 : vector<1x96xf32> to vector<64x96xf32>
    %9 = arith.addf %6, %8 : vector<64x96xf32>
    %c0_13 = arith.constant 0 : index
    %c0_14 = arith.constant 0 : index
    %10 = vector.load %arg1[%c0_13, %c0_14] : memref<64x8xf32, #tpu.memory_space<vmem>>, vector<64x8xf32>
    %c0_15 = arith.constant 0 : index
    %c0_16 = arith.constant 0 : index
    %11 = vector.load %arg7[%c0_15, %c0_16] : memref<8x96xf32, #tpu.memory_space<vmem>>, vector<8x96xf32>
    %cst_17 = arith.constant dense<0.000000e+00> : vector<64x96xf32>
    %12 = tpu.matmul %10, %11, %cst_17 {dimension_numbers = #tpu.dot_dimension_numbers<[1], [0], [0], [1], [0, 0, 1, 1], [], []>} : vector<64x8xf32>, vector<8x96xf32>, vector<64x96xf32> -> vector<64x96xf32>
    %c0_18 = arith.constant 0 : index
    %c0_19 = arith.constant 0 : index
    %13 = vector.load %arg8[%c0_18, %c0_19] : memref<1x96xf32, #tpu.memory_space<vmem>>, vector<1x96xf32>
    %14 = vector.broadcast %13 : vector<1x96xf32> to vector<64x96xf32>
    %15 = arith.addf %12, %14 : vector<64x96xf32>
    %cst_20 = arith.constant 0.000000e+00 : f32
    %16 = vector.broadcast %cst_20 : f32 to vector<8x32xf32>
    %cst_21 = arith.constant 0.000000e+00 : f32
    %17 = vector.broadcast %cst_21 : f32 to vector<8x32xf32>
    %c0_22 = arith.constant 0 : index
    %c0_23 = arith.constant 0 : index
    %c0_24 = arith.constant 0 : index
    %c0_25 = arith.constant 0 : index
    %18 = vector.load %arg2[%c0_22, %c0_23, %c0_24, %c0_25] : memref<8x6x8x32xf32, #tpu.memory_space<vmem>>, vector<1x1x8x32xf32>
    %19 = vector.shape_cast %18 : vector<1x1x8x32xf32> to vector<8x32xf32>
    %c0_26 = arith.constant 0 : index
    %c1 = arith.constant 1 : index
    %c0_27 = arith.constant 0 : index
    %c0_28 = arith.constant 0 : index
    %20 = vector.load %arg2[%c0_26, %c1, %c0_27, %c0_28] : memref<8x6x8x32xf32, #tpu.memory_space<vmem>>, vector<1x1x8x32xf32>
    %21 = vector.shape_cast %20 : vector<1x1x8x32xf32> to vector<8x32xf32>
    %c0_29 = arith.constant 0 : index
    %c2 = arith.constant 2 : index
    %c0_30 = arith.constant 0 : index
    %c0_31 = arith.constant 0 : index
    %22 = vector.load %arg2[%c0_29, %c2, %c0_30, %c0_31] : memref<8x6x8x32xf32, #tpu.memory_space<vmem>>, vector<1x1x8x32xf32>
    %23 = vector.shape_cast %22 : vector<1x1x8x32xf32> to vector<8x32xf32>
    %c0_32 = arith.constant 0 : index
    %c3 = arith.constant 3 : index
    %c0_33 = arith.constant 0 : index
    %c0_34 = arith.constant 0 : index
    %24 = vector.load %arg2[%c0_32, %c3, %c0_33, %c0_34] : memref<8x6x8x32xf32, #tpu.memory_space<vmem>>, vector<1x1x8x32xf32>
    %25 = vector.shape_cast %24 : vector<1x1x8x32xf32> to vector<8x32xf32>
    %c0_35 = arith.constant 0 : index
    %c4 = arith.constant 4 : index
    %c0_36 = arith.constant 0 : index
    %c0_37 = arith.constant 0 : index
    %26 = vector.load %arg2[%c0_35, %c4, %c0_36, %c0_37] : memref<8x6x8x32xf32, #tpu.memory_space<vmem>>, vector<1x1x8x32xf32>
    %27 = vector.shape_cast %26 : vector<1x1x8x32xf32> to vector<8x32xf32>
    %c0_38 = arith.constant 0 : index
    %c5 = arith.constant 5 : index
    %c0_39 = arith.constant 0 : index
    %c0_40 = arith.constant 0 : index
    %28 = vector.load %arg2[%c0_38, %c5, %c0_39, %c0_40] : memref<8x6x8x32xf32, #tpu.memory_space<vmem>>, vector<1x1x8x32xf32>
    %29 = vector.shape_cast %28 : vector<1x1x8x32xf32> to vector<8x32xf32>
    %30 = arith.mulf %19, %17 : vector<8x32xf32>
    %31 = tpu.concatenate %30, %16 in 1 : vector<8x32xf32>, vector<8x32xf32> -> vector<8x64xf32>
    %32 = vector.extract_strided_slice %9 {offsets = [0, 0], sizes = [8, 96], strides = [1, 1]} : vector<64x96xf32> to vector<8x96xf32>
    %cst_41 = arith.constant dense<0.000000e+00> : vector<8x96xf32>
    %33 = tpu.matmul %31, %0, %cst_41 {dimension_numbers = #tpu.dot_dimension_numbers<[1], [0], [0], [1], [0, 0, 1, 1], [], []>} : vector<8x64xf32>, vector<64x96xf32>, vector<8x96xf32> -> vector<8x96xf32>
    %34 = arith.addf %32, %33 : vector<8x96xf32>
    %35 = vector.extract_strided_slice %34 {offsets = [0, 0], sizes = [8, 32], strides = [1, 1]} : vector<8x96xf32> to vector<8x32xf32>
    %36 = arith.negf %35 : vector<8x32xf32>
    %37 = math.exp %36 : vector<8x32xf32>
    %cst_42 = arith.constant 1.000000e+00 : f32
    %38 = vector.broadcast %cst_42 : f32 to vector<8x32xf32>
    %39 = arith.addf %38, %37 : vector<8x32xf32>
    %40 = arith.divf %38, %39 : vector<8x32xf32>
    %41 = vector.extract_strided_slice %34 {offsets = [0, 32], sizes = [8, 32], strides = [1, 1]} : vector<8x96xf32> to vector<8x32xf32>
    %42 = arith.negf %41 : vector<8x32xf32>
    %43 = math.exp %42 : vector<8x32xf32>
    %cst_43 = arith.constant 1.000000e+00 : f32
    %44 = vector.broadcast %cst_43 : f32 to vector<8x32xf32>
    %45 = arith.addf %44, %43 : vector<8x32xf32>
    %46 = arith.divf %44, %45 : vector<8x32xf32>
    %47 = vector.extract_strided_slice %34 {offsets = [0, 64], sizes = [8, 32], strides = [1, 1]} : vector<8x96xf32> to vector<8x32xf32>
    %48 = arith.mulf %46, %16 : vector<8x32xf32>
    %cst_44 = arith.constant dense<0.000000e+00> : vector<8x32xf32>
    %49 = tpu.matmul %48, %1, %cst_44 {dimension_numbers = #tpu.dot_dimension_numbers<[1], [0], [0], [1], [0, 0, 1, 1], [], []>} : vector<8x32xf32>, vector<32x32xf32>, vector<8x32xf32> -> vector<8x32xf32>
    %50 = arith.addf %47, %49 : vector<8x32xf32>
    %51 = math.tanh %50 : vector<8x32xf32>
    %cst_45 = arith.constant 1.000000e+00 : f32
    %52 = vector.broadcast %cst_45 : f32 to vector<8x32xf32>
    %53 = arith.subf %52, %40 : vector<8x32xf32>
    %54 = arith.mulf %53, %51 : vector<8x32xf32>
    %55 = arith.mulf %40, %16 : vector<8x32xf32>
    %56 = arith.mulf %21, %55 : vector<8x32xf32>
    %57 = arith.addf %54, %56 : vector<8x32xf32>
    %58 = arith.mulf %23, %57 : vector<8x32xf32>
    %59 = tpu.concatenate %58, %17 in 1 : vector<8x32xf32>, vector<8x32xf32> -> vector<8x64xf32>
    %60 = vector.extract_strided_slice %15 {offsets = [0, 0], sizes = [8, 96], strides = [1, 1]} : vector<64x96xf32> to vector<8x96xf32>
    %cst_46 = arith.constant dense<0.000000e+00> : vector<8x96xf32>
    %61 = tpu.matmul %59, %2, %cst_46 {dimension_numbers = #tpu.dot_dimension_numbers<[1], [0], [0], [1], [0, 0, 1, 1], [], []>} : vector<8x64xf32>, vector<64x96xf32>, vector<8x96xf32> -> vector<8x96xf32>
    %62 = arith.addf %60, %61 : vector<8x96xf32>
    %63 = vector.extract_strided_slice %62 {offsets = [0, 0], sizes = [8, 32], strides = [1, 1]} : vector<8x96xf32> to vector<8x32xf32>
    %64 = arith.negf %63 : vector<8x32xf32>
    %65 = math.exp %64 : vector<8x32xf32>
    %cst_47 = arith.constant 1.000000e+00 : f32
    %66 = vector.broadcast %cst_47 : f32 to vector<8x32xf32>
    %67 = arith.addf %66, %65 : vector<8x32xf32>
    %68 = arith.divf %66, %67 : vector<8x32xf32>
    %69 = vector.extract_strided_slice %62 {offsets = [0, 32], sizes = [8, 32], strides = [1, 1]} : vector<8x96xf32> to vector<8x32xf32>
    %70 = arith.negf %69 : vector<8x32xf32>
    %71 = math.exp %70 : vector<8x32xf32>
    %cst_48 = arith.constant 1.000000e+00 : f32
    %72 = vector.broadcast %cst_48 : f32 to vector<8x32xf32>
    %73 = arith.addf %72, %71 : vector<8x32xf32>
    %74 = arith.divf %72, %73 : vector<8x32xf32>
    %75 = vector.extract_strided_slice %62 {offsets = [0, 64], sizes = [8, 32], strides = [1, 1]} : vector<8x96xf32> to vector<8x32xf32>
    %76 = arith.mulf %74, %17 : vector<8x32xf32>
    %cst_49 = arith.constant dense<0.000000e+00> : vector<8x32xf32>
    %77 = tpu.matmul %76, %3, %cst_49 {dimension_numbers = #tpu.dot_dimension_numbers<[1], [0], [0], [1], [0, 0, 1, 1], [], []>} : vector<8x32xf32>, vector<32x32xf32>, vector<8x32xf32> -> vector<8x32xf32>
    %78 = arith.addf %75, %77 : vector<8x32xf32>
    %79 = math.tanh %78 : vector<8x32xf32>
    %80 = arith.mulf %27, %68 : vector<8x32xf32>
    %81 = arith.addf %25, %80 : vector<8x32xf32>
    %82 = arith.mulf %81, %17 : vector<8x32xf32>
    %cst_50 = arith.constant 1.000000e+00 : f32
    %83 = vector.broadcast %cst_50 : f32 to vector<8x32xf32>
    %84 = arith.subf %83, %68 : vector<8x32xf32>
    %85 = arith.mulf %84, %79 : vector<8x32xf32>
    %86 = arith.mulf %29, %85 : vector<8x32xf32>
    %87 = arith.addf %82, %86 : vector<8x32xf32>
    %88 = tpu.concatenate %57, %87 in 1 : vector<8x32xf32>, vector<8x32xf32> -> vector<8x64xf32>
    %c0_51 = arith.constant 0 : index
    %c0_52 = arith.constant 0 : index
    %c0_53 = arith.constant 0 : index
    %89 = vector.load %arg11[%c0_51, %c0_52, %c0_53] : memref<8x8x64xf32, #tpu.memory_space<vmem>>, vector<1x8x64xf32>
    %90 = vector.shape_cast %89 : vector<1x8x64xf32> to vector<8x64xf32>
    %91 = vector.shape_cast %88 : vector<8x64xf32> to vector<1x8x64xf32>
    tpu.vector_store %arg11[%c0_51, %c0_52, %c0_53], %91 {strides = array<i32>} : memref<8x8x64xf32, #tpu.memory_space<vmem>>, vector<1x8x64xf32>,
    %c1_54 = arith.constant 1 : index
    %c0_55 = arith.constant 0 : index
    %c0_56 = arith.constant 0 : index
    %c0_57 = arith.constant 0 : index
    %92 = vector.load %arg2[%c1_54, %c0_55, %c0_56, %c0_57] : memref<8x6x8x32xf32, #tpu.memory_space<vmem>>, vector<1x1x8x32xf32>
    %93 = vector.shape_cast %92 : vector<1x1x8x32xf32> to vector<8x32xf32>
    %c1_58 = arith.constant 1 : index
    %c1_59 = arith.constant 1 : index
    %c0_60 = arith.constant 0 : index
    %c0_61 = arith.constant 0 : index
    %94 = vector.load %arg2[%c1_58, %c1_59, %c0_60, %c0_61] : memref<8x6x8x32xf32, #tpu.memory_space<vmem>>, vector<1x1x8x32xf32>
    %95 = vector.shape_cast %94 : vector<1x1x8x32xf32> to vector<8x32xf32>
    %c1_62 = arith.constant 1 : index
    %c2_63 = arith.constant 2 : index
    %c0_64 = arith.constant 0 : index
    %c0_65 = arith.constant 0 : index
    %96 = vector.load %arg2[%c1_62, %c2_63, %c0_64, %c0_65] : memref<8x6x8x32xf32, #tpu.memory_space<vmem>>, vector<1x1x8x32xf32>
    %97 = vector.shape_cast %96 : vector<1x1x8x32xf32> to vector<8x32xf32>
    %c1_66 = arith.constant 1 : index
    %c3_67 = arith.constant 3 : index
    %c0_68 = arith.constant 0 : index
    %c0_69 = arith.constant 0 : index
    %98 = vector.load %arg2[%c1_66, %c3_67, %c0_68, %c0_69] : memref<8x6x8x32xf32, #tpu.memory_space<vmem>>, vector<1x1x8x32xf32>
    %99 = vector.shape_cast %98 : vector<1x1x8x32xf32> to vector<8x32xf32>
    %c1_70 = arith.constant 1 : index
    %c4_71 = arith.constant 4 : index
    %c0_72 = arith.constant 0 : index
    %c0_73 = arith.constant 0 : index
    %100 = vector.load %arg2[%c1_70, %c4_71, %c0_72, %c0_73] : memref<8x6x8x32xf32, #tpu.memory_space<vmem>>, vector<1x1x8x32xf32>
    %101 = vector.shape_cast %100 : vector<1x1x8x32xf32> to vector<8x32xf32>
    %c1_74 = arith.constant 1 : index
    %c5_75 = arith.constant 5 : index
    %c0_76 = arith.constant 0 : index
    %c0_77 = arith.constant 0 : index
    %102 = vector.load %arg2[%c1_74, %c5_75, %c0_76, %c0_77] : memref<8x6x8x32xf32, #tpu.memory_space<vmem>>, vector<1x1x8x32xf32>
    %103 = vector.shape_cast %102 : vector<1x1x8x32xf32> to vector<8x32xf32>
    %104 = arith.mulf %93, %87 : vector<8x32xf32>
    %105 = tpu.concatenate %104, %57 in 1 : vector<8x32xf32>, vector<8x32xf32> -> vector<8x64xf32>
    %106 = vector.extract_strided_slice %9 {offsets = [8, 0], sizes = [8, 96], strides = [1, 1]} : vector<64x96xf32> to vector<8x96xf32>
    %cst_78 = arith.constant dense<0.000000e+00> : vector<8x96xf32>
    %107 = tpu.matmul %105, %0, %cst_78 {dimension_numbers = #tpu.dot_dimension_numbers<[1], [0], [0], [1], [0, 0, 1, 1], [], []>} : vector<8x64xf32>, vector<64x96xf32>, vector<8x96xf32> -> vector<8x96xf32>
    %108 = arith.addf %106, %107 : vector<8x96xf32>
    %109 = vector.extract_strided_slice %108 {offsets = [0, 0], sizes = [8, 32], strides = [1, 1]} : vector<8x96xf32> to vector<8x32xf32>
    %110 = arith.negf %109 : vector<8x32xf32>
    %111 = math.exp %110 : vector<8x32xf32>
    %cst_79 = arith.constant 1.000000e+00 : f32
    %112 = vector.broadcast %cst_79 : f32 to vector<8x32xf32>
    %113 = arith.addf %112, %111 : vector<8x32xf32>
    %114 = arith.divf %112, %113 : vector<8x32xf32>
    %115 = vector.extract_strided_slice %108 {offsets = [0, 32], sizes = [8, 32], strides = [1, 1]} : vector<8x96xf32> to vector<8x32xf32>
    %116 = arith.negf %115 : vector<8x32xf32>
    %117 = math.exp %116 : vector<8x32xf32>
    %cst_80 = arith.constant 1.000000e+00 : f32
    %118 = vector.broadcast %cst_80 : f32 to vector<8x32xf32>
    %119 = arith.addf %118, %117 : vector<8x32xf32>
    %120 = arith.divf %118, %119 : vector<8x32xf32>
    %121 = vector.extract_strided_slice %108 {offsets = [0, 64], sizes = [8, 32], strides = [1, 1]} : vector<8x96xf32> to vector<8x32xf32>
    %122 = arith.mulf %120, %57 : vector<8x32xf32>
    %cst_81 = arith.constant dense<0.000000e+00> : vector<8x32xf32>
    %123 = tpu.matmul %122, %1, %cst_81 {dimension_numbers = #tpu.dot_dimension_numbers<[1], [0], [0], [1], [0, 0, 1, 1], [], []>} : vector<8x32xf32>, vector<32x32xf32>, vector<8x32xf32> -> vector<8x32xf32>
    %124 = arith.addf %121, %123 : vector<8x32xf32>
    %125 = math.tanh %124 : vector<8x32xf32>
    %cst_82 = arith.constant 1.000000e+00 : f32
    %126 = vector.broadcast %cst_82 : f32 to vector<8x32xf32>
    %127 = arith.subf %126, %114 : vector<8x32xf32>
    %128 = arith.mulf %127, %125 : vector<8x32xf32>
    %129 = arith.mulf %114, %57 : vector<8x32xf32>
    %130 = arith.mulf %95, %129 : vector<8x32xf32>
    %131 = arith.addf %128, %130 : vector<8x32xf32>
    %132 = arith.mulf %97, %131 : vector<8x32xf32>
    %133 = tpu.concatenate %132, %87 in 1 : vector<8x32xf32>, vector<8x32xf32> -> vector<8x64xf32>
    %134 = vector.extract_strided_slice %15 {offsets = [8, 0], sizes = [8, 96], strides = [1, 1]} : vector<64x96xf32> to vector<8x96xf32>
    %cst_83 = arith.constant dense<0.000000e+00> : vector<8x96xf32>
    %135 = tpu.matmul %133, %2, %cst_83 {dimension_numbers = #tpu.dot_dimension_numbers<[1], [0], [0], [1], [0, 0, 1, 1], [], []>} : vector<8x64xf32>, vector<64x96xf32>, vector<8x96xf32> -> vector<8x96xf32>
    %136 = arith.addf %134, %135 : vector<8x96xf32>
    %137 = vector.extract_strided_slice %136 {offsets = [0, 0], sizes = [8, 32], strides = [1, 1]} : vector<8x96xf32> to vector<8x32xf32>
    %138 = arith.negf %137 : vector<8x32xf32>
    %139 = math.exp %138 : vector<8x32xf32>
    %cst_84 = arith.constant 1.000000e+00 : f32
    %140 = vector.broadcast %cst_84 : f32 to vector<8x32xf32>
    %141 = arith.addf %140, %139 : vector<8x32xf32>
    %142 = arith.divf %140, %141 : vector<8x32xf32>
    %143 = vector.extract_strided_slice %136 {offsets = [0, 32], sizes = [8, 32], strides = [1, 1]} : vector<8x96xf32> to vector<8x32xf32>
    %144 = arith.negf %143 : vector<8x32xf32>
    %145 = math.exp %144 : vector<8x32xf32>
    %cst_85 = arith.constant 1.000000e+00 : f32
    %146 = vector.broadcast %cst_85 : f32 to vector<8x32xf32>
    %147 = arith.addf %146, %145 : vector<8x32xf32>
    %148 = arith.divf %146, %147 : vector<8x32xf32>
    %149 = vector.extract_strided_slice %136 {offsets = [0, 64], sizes = [8, 32], strides = [1, 1]} : vector<8x96xf32> to vector<8x32xf32>
    %150 = arith.mulf %148, %87 : vector<8x32xf32>
    %cst_86 = arith.constant dense<0.000000e+00> : vector<8x32xf32>
    %151 = tpu.matmul %150, %3, %cst_86 {dimension_numbers = #tpu.dot_dimension_numbers<[1], [0], [0], [1], [0, 0, 1, 1], [], []>} : vector<8x32xf32>, vector<32x32xf32>, vector<8x32xf32> -> vector<8x32xf32>
    %152 = arith.addf %149, %151 : vector<8x32xf32>
    %153 = math.tanh %152 : vector<8x32xf32>
    %154 = arith.mulf %101, %142 : vector<8x32xf32>
    %155 = arith.addf %99, %154 : vector<8x32xf32>
    %156 = arith.mulf %155, %87 : vector<8x32xf32>
    %cst_87 = arith.constant 1.000000e+00 : f32
    %157 = vector.broadcast %cst_87 : f32 to vector<8x32xf32>
    %158 = arith.subf %157, %142 : vector<8x32xf32>
    %159 = arith.mulf %158, %153 : vector<8x32xf32>
    %160 = arith.mulf %103, %159 : vector<8x32xf32>
    %161 = arith.addf %156, %160 : vector<8x32xf32>
    %162 = tpu.concatenate %131, %161 in 1 : vector<8x32xf32>, vector<8x32xf32> -> vector<8x64xf32>
    %c1_88 = arith.constant 1 : index
    %c0_89 = arith.constant 0 : index
    %c0_90 = arith.constant 0 : index
    %163 = vector.load %arg11[%c1_88, %c0_89, %c0_90] : memref<8x8x64xf32, #tpu.memory_space<vmem>>, vector<1x8x64xf32>
    %164 = vector.shape_cast %163 : vector<1x8x64xf32> to vector<8x64xf32>
    %165 = vector.shape_cast %162 : vector<8x64xf32> to vector<1x8x64xf32>
    tpu.vector_store %arg11[%c1_88, %c0_89, %c0_90], %165 {strides = array<i32>} : memref<8x8x64xf32, #tpu.memory_space<vmem>>, vector<1x8x64xf32>,
    %c2_91 = arith.constant 2 : index
    %c0_92 = arith.constant 0 : index
    %c0_93 = arith.constant 0 : index
    %c0_94 = arith.constant 0 : index
    %166 = vector.load %arg2[%c2_91, %c0_92, %c0_93, %c0_94] : memref<8x6x8x32xf32, #tpu.memory_space<vmem>>, vector<1x1x8x32xf32>
    %167 = vector.shape_cast %166 : vector<1x1x8x32xf32> to vector<8x32xf32>
    %c2_95 = arith.constant 2 : index
    %c1_96 = arith.constant 1 : index
    %c0_97 = arith.constant 0 : index
    %c0_98 = arith.constant 0 : index
    %168 = vector.load %arg2[%c2_95, %c1_96, %c0_97, %c0_98] : memref<8x6x8x32xf32, #tpu.memory_space<vmem>>, vector<1x1x8x32xf32>
    %169 = vector.shape_cast %168 : vector<1x1x8x32xf32> to vector<8x32xf32>
    %c2_99 = arith.constant 2 : index
    %c2_100 = arith.constant 2 : index
    %c0_101 = arith.constant 0 : index
    %c0_102 = arith.constant 0 : index
    %170 = vector.load %arg2[%c2_99, %c2_100, %c0_101, %c0_102] : memref<8x6x8x32xf32, #tpu.memory_space<vmem>>, vector<1x1x8x32xf32>
    %171 = vector.shape_cast %170 : vector<1x1x8x32xf32> to vector<8x32xf32>
    %c2_103 = arith.constant 2 : index
    %c3_104 = arith.constant 3 : index
    %c0_105 = arith.constant 0 : index
    %c0_106 = arith.constant 0 : index
    %172 = vector.load %arg2[%c2_103, %c3_104, %c0_105, %c0_106] : memref<8x6x8x32xf32, #tpu.memory_space<vmem>>, vector<1x1x8x32xf32>
    %173 = vector.shape_cast %172 : vector<1x1x8x32xf32> to vector<8x32xf32>
    %c2_107 = arith.constant 2 : index
    %c4_108 = arith.constant 4 : index
    %c0_109 = arith.constant 0 : index
    %c0_110 = arith.constant 0 : index
    %174 = vector.load %arg2[%c2_107, %c4_108, %c0_109, %c0_110] : memref<8x6x8x32xf32, #tpu.memory_space<vmem>>, vector<1x1x8x32xf32>
    %175 = vector.shape_cast %174 : vector<1x1x8x32xf32> to vector<8x32xf32>
    %c2_111 = arith.constant 2 : index
    %c5_112 = arith.constant 5 : index
    %c0_113 = arith.constant 0 : index
    %c0_114 = arith.constant 0 : index
    %176 = vector.load %arg2[%c2_111, %c5_112, %c0_113, %c0_114] : memref<8x6x8x32xf32, #tpu.memory_space<vmem>>, vector<1x1x8x32xf32>
    %177 = vector.shape_cast %176 : vector<1x1x8x32xf32> to vector<8x32xf32>
    %178 = arith.mulf %167, %161 : vector<8x32xf32>
    %179 = tpu.concatenate %178, %131 in 1 : vector<8x32xf32>, vector<8x32xf32> -> vector<8x64xf32>
    %180 = vector.extract_strided_slice %9 {offsets = [16, 0], sizes = [8, 96], strides = [1, 1]} : vector<64x96xf32> to vector<8x96xf32>
    %cst_115 = arith.constant dense<0.000000e+00> : vector<8x96xf32>
    %181 = tpu.matmul %179, %0, %cst_115 {dimension_numbers = #tpu.dot_dimension_numbers<[1], [0], [0], [1], [0, 0, 1, 1], [], []>} : vector<8x64xf32>, vector<64x96xf32>, vector<8x96xf32> -> vector<8x96xf32>
    %182 = arith.addf %180, %181 : vector<8x96xf32>
    %183 = vector.extract_strided_slice %182 {offsets = [0, 0], sizes = [8, 32], strides = [1, 1]} : vector<8x96xf32> to vector<8x32xf32>
    %184 = arith.negf %183 : vector<8x32xf32>
    %185 = math.exp %184 : vector<8x32xf32>
    %cst_116 = arith.constant 1.000000e+00 : f32
    %186 = vector.broadcast %cst_116 : f32 to vector<8x32xf32>
    %187 = arith.addf %186, %185 : vector<8x32xf32>
    %188 = arith.divf %186, %187 : vector<8x32xf32>
    %189 = vector.extract_strided_slice %182 {offsets = [0, 32], sizes = [8, 32], strides = [1, 1]} : vector<8x96xf32> to vector<8x32xf32>
    %190 = arith.negf %189 : vector<8x32xf32>
    %191 = math.exp %190 : vector<8x32xf32>
    %cst_117 = arith.constant 1.000000e+00 : f32
    %192 = vector.broadcast %cst_117 : f32 to vector<8x32xf32>
    %193 = arith.addf %192, %191 : vector<8x32xf32>
    %194 = arith.divf %192, %193 : vector<8x32xf32>
    %195 = vector.extract_strided_slice %182 {offsets = [0, 64], sizes = [8, 32], strides = [1, 1]} : vector<8x96xf32> to vector<8x32xf32>
    %196 = arith.mulf %194, %131 : vector<8x32xf32>
    %cst_118 = arith.constant dense<0.000000e+00> : vector<8x32xf32>
    %197 = tpu.matmul %196, %1, %cst_118 {dimension_numbers = #tpu.dot_dimension_numbers<[1], [0], [0], [1], [0, 0, 1, 1], [], []>} : vector<8x32xf32>, vector<32x32xf32>, vector<8x32xf32> -> vector<8x32xf32>
    %198 = arith.addf %195, %197 : vector<8x32xf32>
    %199 = math.tanh %198 : vector<8x32xf32>
    %cst_119 = arith.constant 1.000000e+00 : f32
    %200 = vector.broadcast %cst_119 : f32 to vector<8x32xf32>
    %201 = arith.subf %200, %188 : vector<8x32xf32>
    %202 = arith.mulf %201, %199 : vector<8x32xf32>
    %203 = arith.mulf %188, %131 : vector<8x32xf32>
    %204 = arith.mulf %169, %203 : vector<8x32xf32>
    %205 = arith.addf %202, %204 : vector<8x32xf32>
    %206 = arith.mulf %171, %205 : vector<8x32xf32>
    %207 = tpu.concatenate %206, %161 in 1 : vector<8x32xf32>, vector<8x32xf32> -> vector<8x64xf32>
    %208 = vector.extract_strided_slice %15 {offsets = [16, 0], sizes = [8, 96], strides = [1, 1]} : vector<64x96xf32> to vector<8x96xf32>
    %cst_120 = arith.constant dense<0.000000e+00> : vector<8x96xf32>
    %209 = tpu.matmul %207, %2, %cst_120 {dimension_numbers = #tpu.dot_dimension_numbers<[1], [0], [0], [1], [0, 0, 1, 1], [], []>} : vector<8x64xf32>, vector<64x96xf32>, vector<8x96xf32> -> vector<8x96xf32>
    %210 = arith.addf %208, %209 : vector<8x96xf32>
    %211 = vector.extract_strided_slice %210 {offsets = [0, 0], sizes = [8, 32], strides = [1, 1]} : vector<8x96xf32> to vector<8x32xf32>
    %212 = arith.negf %211 : vector<8x32xf32>
    %213 = math.exp %212 : vector<8x32xf32>
    %cst_121 = arith.constant 1.000000e+00 : f32
    %214 = vector.broadcast %cst_121 : f32 to vector<8x32xf32>
    %215 = arith.addf %214, %213 : vector<8x32xf32>
    %216 = arith.divf %214, %215 : vector<8x32xf32>
    %217 = vector.extract_strided_slice %210 {offsets = [0, 32], sizes = [8, 32], strides = [1, 1]} : vector<8x96xf32> to vector<8x32xf32>
    %218 = arith.negf %217 : vector<8x32xf32>
    %219 = math.exp %218 : vector<8x32xf32>
    %cst_122 = arith.constant 1.000000e+00 : f32
    %220 = vector.broadcast %cst_122 : f32 to vector<8x32xf32>
    %221 = arith.addf %220, %219 : vector<8x32xf32>
    %222 = arith.divf %220, %221 : vector<8x32xf32>
    %223 = vector.extract_strided_slice %210 {offsets = [0, 64], sizes = [8, 32], strides = [1, 1]} : vector<8x96xf32> to vector<8x32xf32>
    %224 = arith.mulf %222, %161 : vector<8x32xf32>
    %cst_123 = arith.constant dense<0.000000e+00> : vector<8x32xf32>
    %225 = tpu.matmul %224, %3, %cst_123 {dimension_numbers = #tpu.dot_dimension_numbers<[1], [0], [0], [1], [0, 0, 1, 1], [], []>} : vector<8x32xf32>, vector<32x32xf32>, vector<8x32xf32> -> vector<8x32xf32>
    %226 = arith.addf %223, %225 : vector<8x32xf32>
    %227 = math.tanh %226 : vector<8x32xf32>
    %228 = arith.mulf %175, %216 : vector<8x32xf32>
    %229 = arith.addf %173, %228 : vector<8x32xf32>
    %230 = arith.mulf %229, %161 : vector<8x32xf32>
    %cst_124 = arith.constant 1.000000e+00 : f32
    %231 = vector.broadcast %cst_124 : f32 to vector<8x32xf32>
    %232 = arith.subf %231, %216 : vector<8x32xf32>
    %233 = arith.mulf %232, %227 : vector<8x32xf32>
    %234 = arith.mulf %177, %233 : vector<8x32xf32>
    %235 = arith.addf %230, %234 : vector<8x32xf32>
    %236 = tpu.concatenate %205, %235 in 1 : vector<8x32xf32>, vector<8x32xf32> -> vector<8x64xf32>
    %c2_125 = arith.constant 2 : index
    %c0_126 = arith.constant 0 : index
    %c0_127 = arith.constant 0 : index
    %237 = vector.load %arg11[%c2_125, %c0_126, %c0_127] : memref<8x8x64xf32, #tpu.memory_space<vmem>>, vector<1x8x64xf32>
    %238 = vector.shape_cast %237 : vector<1x8x64xf32> to vector<8x64xf32>
    %239 = vector.shape_cast %236 : vector<8x64xf32> to vector<1x8x64xf32>
    tpu.vector_store %arg11[%c2_125, %c0_126, %c0_127], %239 {strides = array<i32>} : memref<8x8x64xf32, #tpu.memory_space<vmem>>, vector<1x8x64xf32>,
    %c3_128 = arith.constant 3 : index
    %c0_129 = arith.constant 0 : index
    %c0_130 = arith.constant 0 : index
    %c0_131 = arith.constant 0 : index
    %240 = vector.load %arg2[%c3_128, %c0_129, %c0_130, %c0_131] : memref<8x6x8x32xf32, #tpu.memory_space<vmem>>, vector<1x1x8x32xf32>
    %241 = vector.shape_cast %240 : vector<1x1x8x32xf32> to vector<8x32xf32>
    %c3_132 = arith.constant 3 : index
    %c1_133 = arith.constant 1 : index
    %c0_134 = arith.constant 0 : index
    %c0_135 = arith.constant 0 : index
    %242 = vector.load %arg2[%c3_132, %c1_133, %c0_134, %c0_135] : memref<8x6x8x32xf32, #tpu.memory_space<vmem>>, vector<1x1x8x32xf32>
    %243 = vector.shape_cast %242 : vector<1x1x8x32xf32> to vector<8x32xf32>
    %c3_136 = arith.constant 3 : index
    %c2_137 = arith.constant 2 : index
    %c0_138 = arith.constant 0 : index
    %c0_139 = arith.constant 0 : index
    %244 = vector.load %arg2[%c3_136, %c2_137, %c0_138, %c0_139] : memref<8x6x8x32xf32, #tpu.memory_space<vmem>>, vector<1x1x8x32xf32>
    %245 = vector.shape_cast %244 : vector<1x1x8x32xf32> to vector<8x32xf32>
    %c3_140 = arith.constant 3 : index
    %c3_141 = arith.constant 3 : index
    %c0_142 = arith.constant 0 : index
    %c0_143 = arith.constant 0 : index
    %246 = vector.load %arg2[%c3_140, %c3_141, %c0_142, %c0_143] : memref<8x6x8x32xf32, #tpu.memory_space<vmem>>, vector<1x1x8x32xf32>
    %247 = vector.shape_cast %246 : vector<1x1x8x32xf32> to vector<8x32xf32>
    %c3_144 = arith.constant 3 : index
    %c4_145 = arith.constant 4 : index
    %c0_146 = arith.constant 0 : index
    %c0_147 = arith.constant 0 : index
    %248 = vector.load %arg2[%c3_144, %c4_145, %c0_146, %c0_147] : memref<8x6x8x32xf32, #tpu.memory_space<vmem>>, vector<1x1x8x32xf32>
    %249 = vector.shape_cast %248 : vector<1x1x8x32xf32> to vector<8x32xf32>
    %c3_148 = arith.constant 3 : index
    %c5_149 = arith.constant 5 : index
    %c0_150 = arith.constant 0 : index
    %c0_151 = arith.constant 0 : index
    %250 = vector.load %arg2[%c3_148, %c5_149, %c0_150, %c0_151] : memref<8x6x8x32xf32, #tpu.memory_space<vmem>>, vector<1x1x8x32xf32>
    %251 = vector.shape_cast %250 : vector<1x1x8x32xf32> to vector<8x32xf32>
    %252 = arith.mulf %241, %235 : vector<8x32xf32>
    %253 = tpu.concatenate %252, %205 in 1 : vector<8x32xf32>, vector<8x32xf32> -> vector<8x64xf32>
    %254 = vector.extract_strided_slice %9 {offsets = [24, 0], sizes = [8, 96], strides = [1, 1]} : vector<64x96xf32> to vector<8x96xf32>
    %cst_152 = arith.constant dense<0.000000e+00> : vector<8x96xf32>
    %255 = tpu.matmul %253, %0, %cst_152 {dimension_numbers = #tpu.dot_dimension_numbers<[1], [0], [0], [1], [0, 0, 1, 1], [], []>} : vector<8x64xf32>, vector<64x96xf32>, vector<8x96xf32> -> vector<8x96xf32>
    %256 = arith.addf %254, %255 : vector<8x96xf32>
    %257 = vector.extract_strided_slice %256 {offsets = [0, 0], sizes = [8, 32], strides = [1, 1]} : vector<8x96xf32> to vector<8x32xf32>
    %258 = arith.negf %257 : vector<8x32xf32>
    %259 = math.exp %258 : vector<8x32xf32>
    %cst_153 = arith.constant 1.000000e+00 : f32
    %260 = vector.broadcast %cst_153 : f32 to vector<8x32xf32>
    %261 = arith.addf %260, %259 : vector<8x32xf32>
    %262 = arith.divf %260, %261 : vector<8x32xf32>
    %263 = vector.extract_strided_slice %256 {offsets = [0, 32], sizes = [8, 32], strides = [1, 1]} : vector<8x96xf32> to vector<8x32xf32>
    %264 = arith.negf %263 : vector<8x32xf32>
    %265 = math.exp %264 : vector<8x32xf32>
    %cst_154 = arith.constant 1.000000e+00 : f32
    %266 = vector.broadcast %cst_154 : f32 to vector<8x32xf32>
    %267 = arith.addf %266, %265 : vector<8x32xf32>
    %268 = arith.divf %266, %267 : vector<8x32xf32>
    %269 = vector.extract_strided_slice %256 {offsets = [0, 64], sizes = [8, 32], strides = [1, 1]} : vector<8x96xf32> to vector<8x32xf32>
    %270 = arith.mulf %268, %205 : vector<8x32xf32>
    %cst_155 = arith.constant dense<0.000000e+00> : vector<8x32xf32>
    %271 = tpu.matmul %270, %1, %cst_155 {dimension_numbers = #tpu.dot_dimension_numbers<[1], [0], [0], [1], [0, 0, 1, 1], [], []>} : vector<8x32xf32>, vector<32x32xf32>, vector<8x32xf32> -> vector<8x32xf32>
    %272 = arith.addf %269, %271 : vector<8x32xf32>
    %273 = math.tanh %272 : vector<8x32xf32>
    %cst_156 = arith.constant 1.000000e+00 : f32
    %274 = vector.broadcast %cst_156 : f32 to vector<8x32xf32>
    %275 = arith.subf %274, %262 : vector<8x32xf32>
    %276 = arith.mulf %275, %273 : vector<8x32xf32>
    %277 = arith.mulf %262, %205 : vector<8x32xf32>
    %278 = arith.mulf %243, %277 : vector<8x32xf32>
    %279 = arith.addf %276, %278 : vector<8x32xf32>
    %280 = arith.mulf %245, %279 : vector<8x32xf32>
    %281 = tpu.concatenate %280, %235 in 1 : vector<8x32xf32>, vector<8x32xf32> -> vector<8x64xf32>
    %282 = vector.extract_strided_slice %15 {offsets = [24, 0], sizes = [8, 96], strides = [1, 1]} : vector<64x96xf32> to vector<8x96xf32>
    %cst_157 = arith.constant dense<0.000000e+00> : vector<8x96xf32>
    %283 = tpu.matmul %281, %2, %cst_157 {dimension_numbers = #tpu.dot_dimension_numbers<[1], [0], [0], [1], [0, 0, 1, 1], [], []>} : vector<8x64xf32>, vector<64x96xf32>, vector<8x96xf32> -> vector<8x96xf32>
    %284 = arith.addf %282, %283 : vector<8x96xf32>
    %285 = vector.extract_strided_slice %284 {offsets = [0, 0], sizes = [8, 32], strides = [1, 1]} : vector<8x96xf32> to vector<8x32xf32>
    %286 = arith.negf %285 : vector<8x32xf32>
    %287 = math.exp %286 : vector<8x32xf32>
    %cst_158 = arith.constant 1.000000e+00 : f32
    %288 = vector.broadcast %cst_158 : f32 to vector<8x32xf32>
    %289 = arith.addf %288, %287 : vector<8x32xf32>
    %290 = arith.divf %288, %289 : vector<8x32xf32>
    %291 = vector.extract_strided_slice %284 {offsets = [0, 32], sizes = [8, 32], strides = [1, 1]} : vector<8x96xf32> to vector<8x32xf32>
    %292 = arith.negf %291 : vector<8x32xf32>
    %293 = math.exp %292 : vector<8x32xf32>
    %cst_159 = arith.constant 1.000000e+00 : f32
    %294 = vector.broadcast %cst_159 : f32 to vector<8x32xf32>
    %295 = arith.addf %294, %293 : vector<8x32xf32>
    %296 = arith.divf %294, %295 : vector<8x32xf32>
    %297 = vector.extract_strided_slice %284 {offsets = [0, 64], sizes = [8, 32], strides = [1, 1]} : vector<8x96xf32> to vector<8x32xf32>
    %298 = arith.mulf %296, %235 : vector<8x32xf32>
    %cst_160 = arith.constant dense<0.000000e+00> : vector<8x32xf32>
    %299 = tpu.matmul %298, %3, %cst_160 {dimension_numbers = #tpu.dot_dimension_numbers<[1], [0], [0], [1], [0, 0, 1, 1], [], []>} : vector<8x32xf32>, vector<32x32xf32>, vector<8x32xf32> -> vector<8x32xf32>
    %300 = arith.addf %297, %299 : vector<8x32xf32>
    %301 = math.tanh %300 : vector<8x32xf32>
    %302 = arith.mulf %249, %290 : vector<8x32xf32>
    %303 = arith.addf %247, %302 : vector<8x32xf32>
    %304 = arith.mulf %303, %235 : vector<8x32xf32>
    %cst_161 = arith.constant 1.000000e+00 : f32
    %305 = vector.broadcast %cst_161 : f32 to vector<8x32xf32>
    %306 = arith.subf %305, %290 : vector<8x32xf32>
    %307 = arith.mulf %306, %301 : vector<8x32xf32>
    %308 = arith.mulf %251, %307 : vector<8x32xf32>
    %309 = arith.addf %304, %308 : vector<8x32xf32>
    %310 = tpu.concatenate %279, %309 in 1 : vector<8x32xf32>, vector<8x32xf32> -> vector<8x64xf32>
    %c3_162 = arith.constant 3 : index
    %c0_163 = arith.constant 0 : index
    %c0_164 = arith.constant 0 : index
    %311 = vector.load %arg11[%c3_162, %c0_163, %c0_164] : memref<8x8x64xf32, #tpu.memory_space<vmem>>, vector<1x8x64xf32>
    %312 = vector.shape_cast %311 : vector<1x8x64xf32> to vector<8x64xf32>
    %313 = vector.shape_cast %310 : vector<8x64xf32> to vector<1x8x64xf32>
    tpu.vector_store %arg11[%c3_162, %c0_163, %c0_164], %313 {strides = array<i32>} : memref<8x8x64xf32, #tpu.memory_space<vmem>>, vector<1x8x64xf32>,
    %c4_165 = arith.constant 4 : index
    %c0_166 = arith.constant 0 : index
    %c0_167 = arith.constant 0 : index
    %c0_168 = arith.constant 0 : index
    %314 = vector.load %arg2[%c4_165, %c0_166, %c0_167, %c0_168] : memref<8x6x8x32xf32, #tpu.memory_space<vmem>>, vector<1x1x8x32xf32>
    %315 = vector.shape_cast %314 : vector<1x1x8x32xf32> to vector<8x32xf32>
    %c4_169 = arith.constant 4 : index
    %c1_170 = arith.constant 1 : index
    %c0_171 = arith.constant 0 : index
    %c0_172 = arith.constant 0 : index
    %316 = vector.load %arg2[%c4_169, %c1_170, %c0_171, %c0_172] : memref<8x6x8x32xf32, #tpu.memory_space<vmem>>, vector<1x1x8x32xf32>
    %317 = vector.shape_cast %316 : vector<1x1x8x32xf32> to vector<8x32xf32>
    %c4_173 = arith.constant 4 : index
    %c2_174 = arith.constant 2 : index
    %c0_175 = arith.constant 0 : index
    %c0_176 = arith.constant 0 : index
    %318 = vector.load %arg2[%c4_173, %c2_174, %c0_175, %c0_176] : memref<8x6x8x32xf32, #tpu.memory_space<vmem>>, vector<1x1x8x32xf32>
    %319 = vector.shape_cast %318 : vector<1x1x8x32xf32> to vector<8x32xf32>
    %c4_177 = arith.constant 4 : index
    %c3_178 = arith.constant 3 : index
    %c0_179 = arith.constant 0 : index
    %c0_180 = arith.constant 0 : index
    %320 = vector.load %arg2[%c4_177, %c3_178, %c0_179, %c0_180] : memref<8x6x8x32xf32, #tpu.memory_space<vmem>>, vector<1x1x8x32xf32>
    %321 = vector.shape_cast %320 : vector<1x1x8x32xf32> to vector<8x32xf32>
    %c4_181 = arith.constant 4 : index
    %c4_182 = arith.constant 4 : index
    %c0_183 = arith.constant 0 : index
    %c0_184 = arith.constant 0 : index
    %322 = vector.load %arg2[%c4_181, %c4_182, %c0_183, %c0_184] : memref<8x6x8x32xf32, #tpu.memory_space<vmem>>, vector<1x1x8x32xf32>
    %323 = vector.shape_cast %322 : vector<1x1x8x32xf32> to vector<8x32xf32>
    %c4_185 = arith.constant 4 : index
    %c5_186 = arith.constant 5 : index
    %c0_187 = arith.constant 0 : index
    %c0_188 = arith.constant 0 : index
    %324 = vector.load %arg2[%c4_185, %c5_186, %c0_187, %c0_188] : memref<8x6x8x32xf32, #tpu.memory_space<vmem>>, vector<1x1x8x32xf32>
    %325 = vector.shape_cast %324 : vector<1x1x8x32xf32> to vector<8x32xf32>
    %326 = arith.mulf %315, %309 : vector<8x32xf32>
    %327 = tpu.concatenate %326, %279 in 1 : vector<8x32xf32>, vector<8x32xf32> -> vector<8x64xf32>
    %328 = vector.extract_strided_slice %9 {offsets = [32, 0], sizes = [8, 96], strides = [1, 1]} : vector<64x96xf32> to vector<8x96xf32>
    %cst_189 = arith.constant dense<0.000000e+00> : vector<8x96xf32>
    %329 = tpu.matmul %327, %0, %cst_189 {dimension_numbers = #tpu.dot_dimension_numbers<[1], [0], [0], [1], [0, 0, 1, 1], [], []>} : vector<8x64xf32>, vector<64x96xf32>, vector<8x96xf32> -> vector<8x96xf32>
    %330 = arith.addf %328, %329 : vector<8x96xf32>
    %331 = vector.extract_strided_slice %330 {offsets = [0, 0], sizes = [8, 32], strides = [1, 1]} : vector<8x96xf32> to vector<8x32xf32>
    %332 = arith.negf %331 : vector<8x32xf32>
    %333 = math.exp %332 : vector<8x32xf32>
    %cst_190 = arith.constant 1.000000e+00 : f32
    %334 = vector.broadcast %cst_190 : f32 to vector<8x32xf32>
    %335 = arith.addf %334, %333 : vector<8x32xf32>
    %336 = arith.divf %334, %335 : vector<8x32xf32>
    %337 = vector.extract_strided_slice %330 {offsets = [0, 32], sizes = [8, 32], strides = [1, 1]} : vector<8x96xf32> to vector<8x32xf32>
    %338 = arith.negf %337 : vector<8x32xf32>
    %339 = math.exp %338 : vector<8x32xf32>
    %cst_191 = arith.constant 1.000000e+00 : f32
    %340 = vector.broadcast %cst_191 : f32 to vector<8x32xf32>
    %341 = arith.addf %340, %339 : vector<8x32xf32>
    %342 = arith.divf %340, %341 : vector<8x32xf32>
    %343 = vector.extract_strided_slice %330 {offsets = [0, 64], sizes = [8, 32], strides = [1, 1]} : vector<8x96xf32> to vector<8x32xf32>
    %344 = arith.mulf %342, %279 : vector<8x32xf32>
    %cst_192 = arith.constant dense<0.000000e+00> : vector<8x32xf32>
    %345 = tpu.matmul %344, %1, %cst_192 {dimension_numbers = #tpu.dot_dimension_numbers<[1], [0], [0], [1], [0, 0, 1, 1], [], []>} : vector<8x32xf32>, vector<32x32xf32>, vector<8x32xf32> -> vector<8x32xf32>
    %346 = arith.addf %343, %345 : vector<8x32xf32>
    %347 = math.tanh %346 : vector<8x32xf32>
    %cst_193 = arith.constant 1.000000e+00 : f32
    %348 = vector.broadcast %cst_193 : f32 to vector<8x32xf32>
    %349 = arith.subf %348, %336 : vector<8x32xf32>
    %350 = arith.mulf %349, %347 : vector<8x32xf32>
    %351 = arith.mulf %336, %279 : vector<8x32xf32>
    %352 = arith.mulf %317, %351 : vector<8x32xf32>
    %353 = arith.addf %350, %352 : vector<8x32xf32>
    %354 = arith.mulf %319, %353 : vector<8x32xf32>
    %355 = tpu.concatenate %354, %309 in 1 : vector<8x32xf32>, vector<8x32xf32> -> vector<8x64xf32>
    %356 = vector.extract_strided_slice %15 {offsets = [32, 0], sizes = [8, 96], strides = [1, 1]} : vector<64x96xf32> to vector<8x96xf32>
    %cst_194 = arith.constant dense<0.000000e+00> : vector<8x96xf32>
    %357 = tpu.matmul %355, %2, %cst_194 {dimension_numbers = #tpu.dot_dimension_numbers<[1], [0], [0], [1], [0, 0, 1, 1], [], []>} : vector<8x64xf32>, vector<64x96xf32>, vector<8x96xf32> -> vector<8x96xf32>
    %358 = arith.addf %356, %357 : vector<8x96xf32>
    %359 = vector.extract_strided_slice %358 {offsets = [0, 0], sizes = [8, 32], strides = [1, 1]} : vector<8x96xf32> to vector<8x32xf32>
    %360 = arith.negf %359 : vector<8x32xf32>
    %361 = math.exp %360 : vector<8x32xf32>
    %cst_195 = arith.constant 1.000000e+00 : f32
    %362 = vector.broadcast %cst_195 : f32 to vector<8x32xf32>
    %363 = arith.addf %362, %361 : vector<8x32xf32>
    %364 = arith.divf %362, %363 : vector<8x32xf32>
    %365 = vector.extract_strided_slice %358 {offsets = [0, 32], sizes = [8, 32], strides = [1, 1]} : vector<8x96xf32> to vector<8x32xf32>
    %366 = arith.negf %365 : vector<8x32xf32>
    %367 = math.exp %366 : vector<8x32xf32>
    %cst_196 = arith.constant 1.000000e+00 : f32
    %368 = vector.broadcast %cst_196 : f32 to vector<8x32xf32>
    %369 = arith.addf %368, %367 : vector<8x32xf32>
    %370 = arith.divf %368, %369 : vector<8x32xf32>
    %371 = vector.extract_strided_slice %358 {offsets = [0, 64], sizes = [8, 32], strides = [1, 1]} : vector<8x96xf32> to vector<8x32xf32>
    %372 = arith.mulf %370, %309 : vector<8x32xf32>
    %cst_197 = arith.constant dense<0.000000e+00> : vector<8x32xf32>
    %373 = tpu.matmul %372, %3, %cst_197 {dimension_numbers = #tpu.dot_dimension_numbers<[1], [0], [0], [1], [0, 0, 1, 1], [], []>} : vector<8x32xf32>, vector<32x32xf32>, vector<8x32xf32> -> vector<8x32xf32>
    %374 = arith.addf %371, %373 : vector<8x32xf32>
    %375 = math.tanh %374 : vector<8x32xf32>
    %376 = arith.mulf %323, %364 : vector<8x32xf32>
    %377 = arith.addf %321, %376 : vector<8x32xf32>
    %378 = arith.mulf %377, %309 : vector<8x32xf32>
    %cst_198 = arith.constant 1.000000e+00 : f32
    %379 = vector.broadcast %cst_198 : f32 to vector<8x32xf32>
    %380 = arith.subf %379, %364 : vector<8x32xf32>
    %381 = arith.mulf %380, %375 : vector<8x32xf32>
    %382 = arith.mulf %325, %381 : vector<8x32xf32>
    %383 = arith.addf %378, %382 : vector<8x32xf32>
    %384 = tpu.concatenate %353, %383 in 1 : vector<8x32xf32>, vector<8x32xf32> -> vector<8x64xf32>
    %c4_199 = arith.constant 4 : index
    %c0_200 = arith.constant 0 : index
    %c0_201 = arith.constant 0 : index
    %385 = vector.load %arg11[%c4_199, %c0_200, %c0_201] : memref<8x8x64xf32, #tpu.memory_space<vmem>>, vector<1x8x64xf32>
    %386 = vector.shape_cast %385 : vector<1x8x64xf32> to vector<8x64xf32>
    %387 = vector.shape_cast %384 : vector<8x64xf32> to vector<1x8x64xf32>
    tpu.vector_store %arg11[%c4_199, %c0_200, %c0_201], %387 {strides = array<i32>} : memref<8x8x64xf32, #tpu.memory_space<vmem>>, vector<1x8x64xf32>,
    %c5_202 = arith.constant 5 : index
    %c0_203 = arith.constant 0 : index
    %c0_204 = arith.constant 0 : index
    %c0_205 = arith.constant 0 : index
    %388 = vector.load %arg2[%c5_202, %c0_203, %c0_204, %c0_205] : memref<8x6x8x32xf32, #tpu.memory_space<vmem>>, vector<1x1x8x32xf32>
    %389 = vector.shape_cast %388 : vector<1x1x8x32xf32> to vector<8x32xf32>
    %c5_206 = arith.constant 5 : index
    %c1_207 = arith.constant 1 : index
    %c0_208 = arith.constant 0 : index
    %c0_209 = arith.constant 0 : index
    %390 = vector.load %arg2[%c5_206, %c1_207, %c0_208, %c0_209] : memref<8x6x8x32xf32, #tpu.memory_space<vmem>>, vector<1x1x8x32xf32>
    %391 = vector.shape_cast %390 : vector<1x1x8x32xf32> to vector<8x32xf32>
    %c5_210 = arith.constant 5 : index
    %c2_211 = arith.constant 2 : index
    %c0_212 = arith.constant 0 : index
    %c0_213 = arith.constant 0 : index
    %392 = vector.load %arg2[%c5_210, %c2_211, %c0_212, %c0_213] : memref<8x6x8x32xf32, #tpu.memory_space<vmem>>, vector<1x1x8x32xf32>
    %393 = vector.shape_cast %392 : vector<1x1x8x32xf32> to vector<8x32xf32>
    %c5_214 = arith.constant 5 : index
    %c3_215 = arith.constant 3 : index
    %c0_216 = arith.constant 0 : index
    %c0_217 = arith.constant 0 : index
    %394 = vector.load %arg2[%c5_214, %c3_215, %c0_216, %c0_217] : memref<8x6x8x32xf32, #tpu.memory_space<vmem>>, vector<1x1x8x32xf32>
    %395 = vector.shape_cast %394 : vector<1x1x8x32xf32> to vector<8x32xf32>
    %c5_218 = arith.constant 5 : index
    %c4_219 = arith.constant 4 : index
    %c0_220 = arith.constant 0 : index
    %c0_221 = arith.constant 0 : index
    %396 = vector.load %arg2[%c5_218, %c4_219, %c0_220, %c0_221] : memref<8x6x8x32xf32, #tpu.memory_space<vmem>>, vector<1x1x8x32xf32>
    %397 = vector.shape_cast %396 : vector<1x1x8x32xf32> to vector<8x32xf32>
    %c5_222 = arith.constant 5 : index
    %c5_223 = arith.constant 5 : index
    %c0_224 = arith.constant 0 : index
    %c0_225 = arith.constant 0 : index
    %398 = vector.load %arg2[%c5_222, %c5_223, %c0_224, %c0_225] : memref<8x6x8x32xf32, #tpu.memory_space<vmem>>, vector<1x1x8x32xf32>
    %399 = vector.shape_cast %398 : vector<1x1x8x32xf32> to vector<8x32xf32>
    %400 = arith.mulf %389, %383 : vector<8x32xf32>
    %401 = tpu.concatenate %400, %353 in 1 : vector<8x32xf32>, vector<8x32xf32> -> vector<8x64xf32>
    %402 = vector.extract_strided_slice %9 {offsets = [40, 0], sizes = [8, 96], strides = [1, 1]} : vector<64x96xf32> to vector<8x96xf32>
    %cst_226 = arith.constant dense<0.000000e+00> : vector<8x96xf32>
    %403 = tpu.matmul %401, %0, %cst_226 {dimension_numbers = #tpu.dot_dimension_numbers<[1], [0], [0], [1], [0, 0, 1, 1], [], []>} : vector<8x64xf32>, vector<64x96xf32>, vector<8x96xf32> -> vector<8x96xf32>
    %404 = arith.addf %402, %403 : vector<8x96xf32>
    %405 = vector.extract_strided_slice %404 {offsets = [0, 0], sizes = [8, 32], strides = [1, 1]} : vector<8x96xf32> to vector<8x32xf32>
    %406 = arith.negf %405 : vector<8x32xf32>
    %407 = math.exp %406 : vector<8x32xf32>
    %cst_227 = arith.constant 1.000000e+00 : f32
    %408 = vector.broadcast %cst_227 : f32 to vector<8x32xf32>
    %409 = arith.addf %408, %407 : vector<8x32xf32>
    %410 = arith.divf %408, %409 : vector<8x32xf32>
    %411 = vector.extract_strided_slice %404 {offsets = [0, 32], sizes = [8, 32], strides = [1, 1]} : vector<8x96xf32> to vector<8x32xf32>
    %412 = arith.negf %411 : vector<8x32xf32>
    %413 = math.exp %412 : vector<8x32xf32>
    %cst_228 = arith.constant 1.000000e+00 : f32
    %414 = vector.broadcast %cst_228 : f32 to vector<8x32xf32>
    %415 = arith.addf %414, %413 : vector<8x32xf32>
    %416 = arith.divf %414, %415 : vector<8x32xf32>
    %417 = vector.extract_strided_slice %404 {offsets = [0, 64], sizes = [8, 32], strides = [1, 1]} : vector<8x96xf32> to vector<8x32xf32>
    %418 = arith.mulf %416, %353 : vector<8x32xf32>
    %cst_229 = arith.constant dense<0.000000e+00> : vector<8x32xf32>
    %419 = tpu.matmul %418, %1, %cst_229 {dimension_numbers = #tpu.dot_dimension_numbers<[1], [0], [0], [1], [0, 0, 1, 1], [], []>} : vector<8x32xf32>, vector<32x32xf32>, vector<8x32xf32> -> vector<8x32xf32>
    %420 = arith.addf %417, %419 : vector<8x32xf32>
    %421 = math.tanh %420 : vector<8x32xf32>
    %cst_230 = arith.constant 1.000000e+00 : f32
    %422 = vector.broadcast %cst_230 : f32 to vector<8x32xf32>
    %423 = arith.subf %422, %410 : vector<8x32xf32>
    %424 = arith.mulf %423, %421 : vector<8x32xf32>
    %425 = arith.mulf %410, %353 : vector<8x32xf32>
    %426 = arith.mulf %391, %425 : vector<8x32xf32>
    %427 = arith.addf %424, %426 : vector<8x32xf32>
    %428 = arith.mulf %393, %427 : vector<8x32xf32>
    %429 = tpu.concatenate %428, %383 in 1 : vector<8x32xf32>, vector<8x32xf32> -> vector<8x64xf32>
    %430 = vector.extract_strided_slice %15 {offsets = [40, 0], sizes = [8, 96], strides = [1, 1]} : vector<64x96xf32> to vector<8x96xf32>
    %cst_231 = arith.constant dense<0.000000e+00> : vector<8x96xf32>
    %431 = tpu.matmul %429, %2, %cst_231 {dimension_numbers = #tpu.dot_dimension_numbers<[1], [0], [0], [1], [0, 0, 1, 1], [], []>} : vector<8x64xf32>, vector<64x96xf32>, vector<8x96xf32> -> vector<8x96xf32>
    %432 = arith.addf %430, %431 : vector<8x96xf32>
    %433 = vector.extract_strided_slice %432 {offsets = [0, 0], sizes = [8, 32], strides = [1, 1]} : vector<8x96xf32> to vector<8x32xf32>
    %434 = arith.negf %433 : vector<8x32xf32>
    %435 = math.exp %434 : vector<8x32xf32>
    %cst_232 = arith.constant 1.000000e+00 : f32
    %436 = vector.broadcast %cst_232 : f32 to vector<8x32xf32>
    %437 = arith.addf %436, %435 : vector<8x32xf32>
    %438 = arith.divf %436, %437 : vector<8x32xf32>
    %439 = vector.extract_strided_slice %432 {offsets = [0, 32], sizes = [8, 32], strides = [1, 1]} : vector<8x96xf32> to vector<8x32xf32>
    %440 = arith.negf %439 : vector<8x32xf32>
    %441 = math.exp %440 : vector<8x32xf32>
    %cst_233 = arith.constant 1.000000e+00 : f32
    %442 = vector.broadcast %cst_233 : f32 to vector<8x32xf32>
    %443 = arith.addf %442, %441 : vector<8x32xf32>
    %444 = arith.divf %442, %443 : vector<8x32xf32>
    %445 = vector.extract_strided_slice %432 {offsets = [0, 64], sizes = [8, 32], strides = [1, 1]} : vector<8x96xf32> to vector<8x32xf32>
    %446 = arith.mulf %444, %383 : vector<8x32xf32>
    %cst_234 = arith.constant dense<0.000000e+00> : vector<8x32xf32>
    %447 = tpu.matmul %446, %3, %cst_234 {dimension_numbers = #tpu.dot_dimension_numbers<[1], [0], [0], [1], [0, 0, 1, 1], [], []>} : vector<8x32xf32>, vector<32x32xf32>, vector<8x32xf32> -> vector<8x32xf32>
    %448 = arith.addf %445, %447 : vector<8x32xf32>
    %449 = math.tanh %448 : vector<8x32xf32>
    %450 = arith.mulf %397, %438 : vector<8x32xf32>
    %451 = arith.addf %395, %450 : vector<8x32xf32>
    %452 = arith.mulf %451, %383 : vector<8x32xf32>
    %cst_235 = arith.constant 1.000000e+00 : f32
    %453 = vector.broadcast %cst_235 : f32 to vector<8x32xf32>
    %454 = arith.subf %453, %438 : vector<8x32xf32>
    %455 = arith.mulf %454, %449 : vector<8x32xf32>
    %456 = arith.mulf %399, %455 : vector<8x32xf32>
    %457 = arith.addf %452, %456 : vector<8x32xf32>
    %458 = tpu.concatenate %427, %457 in 1 : vector<8x32xf32>, vector<8x32xf32> -> vector<8x64xf32>
    %c5_236 = arith.constant 5 : index
    %c0_237 = arith.constant 0 : index
    %c0_238 = arith.constant 0 : index
    %459 = vector.load %arg11[%c5_236, %c0_237, %c0_238] : memref<8x8x64xf32, #tpu.memory_space<vmem>>, vector<1x8x64xf32>
    %460 = vector.shape_cast %459 : vector<1x8x64xf32> to vector<8x64xf32>
    %461 = vector.shape_cast %458 : vector<8x64xf32> to vector<1x8x64xf32>
    tpu.vector_store %arg11[%c5_236, %c0_237, %c0_238], %461 {strides = array<i32>} : memref<8x8x64xf32, #tpu.memory_space<vmem>>, vector<1x8x64xf32>,
    %c6 = arith.constant 6 : index
    %c0_239 = arith.constant 0 : index
    %c0_240 = arith.constant 0 : index
    %c0_241 = arith.constant 0 : index
    %462 = vector.load %arg2[%c6, %c0_239, %c0_240, %c0_241] : memref<8x6x8x32xf32, #tpu.memory_space<vmem>>, vector<1x1x8x32xf32>
    %463 = vector.shape_cast %462 : vector<1x1x8x32xf32> to vector<8x32xf32>
    %c6_242 = arith.constant 6 : index
    %c1_243 = arith.constant 1 : index
    %c0_244 = arith.constant 0 : index
    %c0_245 = arith.constant 0 : index
    %464 = vector.load %arg2[%c6_242, %c1_243, %c0_244, %c0_245] : memref<8x6x8x32xf32, #tpu.memory_space<vmem>>, vector<1x1x8x32xf32>
    %465 = vector.shape_cast %464 : vector<1x1x8x32xf32> to vector<8x32xf32>
    %c6_246 = arith.constant 6 : index
    %c2_247 = arith.constant 2 : index
    %c0_248 = arith.constant 0 : index
    %c0_249 = arith.constant 0 : index
    %466 = vector.load %arg2[%c6_246, %c2_247, %c0_248, %c0_249] : memref<8x6x8x32xf32, #tpu.memory_space<vmem>>, vector<1x1x8x32xf32>
    %467 = vector.shape_cast %466 : vector<1x1x8x32xf32> to vector<8x32xf32>
    %c6_250 = arith.constant 6 : index
    %c3_251 = arith.constant 3 : index
    %c0_252 = arith.constant 0 : index
    %c0_253 = arith.constant 0 : index
    %468 = vector.load %arg2[%c6_250, %c3_251, %c0_252, %c0_253] : memref<8x6x8x32xf32, #tpu.memory_space<vmem>>, vector<1x1x8x32xf32>
    %469 = vector.shape_cast %468 : vector<1x1x8x32xf32> to vector<8x32xf32>
    %c6_254 = arith.constant 6 : index
    %c4_255 = arith.constant 4 : index
    %c0_256 = arith.constant 0 : index
    %c0_257 = arith.constant 0 : index
    %470 = vector.load %arg2[%c6_254, %c4_255, %c0_256, %c0_257] : memref<8x6x8x32xf32, #tpu.memory_space<vmem>>, vector<1x1x8x32xf32>
    %471 = vector.shape_cast %470 : vector<1x1x8x32xf32> to vector<8x32xf32>
    %c6_258 = arith.constant 6 : index
    %c5_259 = arith.constant 5 : index
    %c0_260 = arith.constant 0 : index
    %c0_261 = arith.constant 0 : index
    %472 = vector.load %arg2[%c6_258, %c5_259, %c0_260, %c0_261] : memref<8x6x8x32xf32, #tpu.memory_space<vmem>>, vector<1x1x8x32xf32>
    %473 = vector.shape_cast %472 : vector<1x1x8x32xf32> to vector<8x32xf32>
    %474 = arith.mulf %463, %457 : vector<8x32xf32>
    %475 = tpu.concatenate %474, %427 in 1 : vector<8x32xf32>, vector<8x32xf32> -> vector<8x64xf32>
    %476 = vector.extract_strided_slice %9 {offsets = [48, 0], sizes = [8, 96], strides = [1, 1]} : vector<64x96xf32> to vector<8x96xf32>
    %cst_262 = arith.constant dense<0.000000e+00> : vector<8x96xf32>
    %477 = tpu.matmul %475, %0, %cst_262 {dimension_numbers = #tpu.dot_dimension_numbers<[1], [0], [0], [1], [0, 0, 1, 1], [], []>} : vector<8x64xf32>, vector<64x96xf32>, vector<8x96xf32> -> vector<8x96xf32>
    %478 = arith.addf %476, %477 : vector<8x96xf32>
    %479 = vector.extract_strided_slice %478 {offsets = [0, 0], sizes = [8, 32], strides = [1, 1]} : vector<8x96xf32> to vector<8x32xf32>
    %480 = arith.negf %479 : vector<8x32xf32>
    %481 = math.exp %480 : vector<8x32xf32>
    %cst_263 = arith.constant 1.000000e+00 : f32
    %482 = vector.broadcast %cst_263 : f32 to vector<8x32xf32>
    %483 = arith.addf %482, %481 : vector<8x32xf32>
    %484 = arith.divf %482, %483 : vector<8x32xf32>
    %485 = vector.extract_strided_slice %478 {offsets = [0, 32], sizes = [8, 32], strides = [1, 1]} : vector<8x96xf32> to vector<8x32xf32>
    %486 = arith.negf %485 : vector<8x32xf32>
    %487 = math.exp %486 : vector<8x32xf32>
    %cst_264 = arith.constant 1.000000e+00 : f32
    %488 = vector.broadcast %cst_264 : f32 to vector<8x32xf32>
    %489 = arith.addf %488, %487 : vector<8x32xf32>
    %490 = arith.divf %488, %489 : vector<8x32xf32>
    %491 = vector.extract_strided_slice %478 {offsets = [0, 64], sizes = [8, 32], strides = [1, 1]} : vector<8x96xf32> to vector<8x32xf32>
    %492 = arith.mulf %490, %427 : vector<8x32xf32>
    %cst_265 = arith.constant dense<0.000000e+00> : vector<8x32xf32>
    %493 = tpu.matmul %492, %1, %cst_265 {dimension_numbers = #tpu.dot_dimension_numbers<[1], [0], [0], [1], [0, 0, 1, 1], [], []>} : vector<8x32xf32>, vector<32x32xf32>, vector<8x32xf32> -> vector<8x32xf32>
    %494 = arith.addf %491, %493 : vector<8x32xf32>
    %495 = math.tanh %494 : vector<8x32xf32>
    %cst_266 = arith.constant 1.000000e+00 : f32
    %496 = vector.broadcast %cst_266 : f32 to vector<8x32xf32>
    %497 = arith.subf %496, %484 : vector<8x32xf32>
    %498 = arith.mulf %497, %495 : vector<8x32xf32>
    %499 = arith.mulf %484, %427 : vector<8x32xf32>
    %500 = arith.mulf %465, %499 : vector<8x32xf32>
    %501 = arith.addf %498, %500 : vector<8x32xf32>
    %502 = arith.mulf %467, %501 : vector<8x32xf32>
    %503 = tpu.concatenate %502, %457 in 1 : vector<8x32xf32>, vector<8x32xf32> -> vector<8x64xf32>
    %504 = vector.extract_strided_slice %15 {offsets = [48, 0], sizes = [8, 96], strides = [1, 1]} : vector<64x96xf32> to vector<8x96xf32>
    %cst_267 = arith.constant dense<0.000000e+00> : vector<8x96xf32>
    %505 = tpu.matmul %503, %2, %cst_267 {dimension_numbers = #tpu.dot_dimension_numbers<[1], [0], [0], [1], [0, 0, 1, 1], [], []>} : vector<8x64xf32>, vector<64x96xf32>, vector<8x96xf32> -> vector<8x96xf32>
    %506 = arith.addf %504, %505 : vector<8x96xf32>
    %507 = vector.extract_strided_slice %506 {offsets = [0, 0], sizes = [8, 32], strides = [1, 1]} : vector<8x96xf32> to vector<8x32xf32>
    %508 = arith.negf %507 : vector<8x32xf32>
    %509 = math.exp %508 : vector<8x32xf32>
    %cst_268 = arith.constant 1.000000e+00 : f32
    %510 = vector.broadcast %cst_268 : f32 to vector<8x32xf32>
    %511 = arith.addf %510, %509 : vector<8x32xf32>
    %512 = arith.divf %510, %511 : vector<8x32xf32>
    %513 = vector.extract_strided_slice %506 {offsets = [0, 32], sizes = [8, 32], strides = [1, 1]} : vector<8x96xf32> to vector<8x32xf32>
    %514 = arith.negf %513 : vector<8x32xf32>
    %515 = math.exp %514 : vector<8x32xf32>
    %cst_269 = arith.constant 1.000000e+00 : f32
    %516 = vector.broadcast %cst_269 : f32 to vector<8x32xf32>
    %517 = arith.addf %516, %515 : vector<8x32xf32>
    %518 = arith.divf %516, %517 : vector<8x32xf32>
    %519 = vector.extract_strided_slice %506 {offsets = [0, 64], sizes = [8, 32], strides = [1, 1]} : vector<8x96xf32> to vector<8x32xf32>
    %520 = arith.mulf %518, %457 : vector<8x32xf32>
    %cst_270 = arith.constant dense<0.000000e+00> : vector<8x32xf32>
    %521 = tpu.matmul %520, %3, %cst_270 {dimension_numbers = #tpu.dot_dimension_numbers<[1], [0], [0], [1], [0, 0, 1, 1], [], []>} : vector<8x32xf32>, vector<32x32xf32>, vector<8x32xf32> -> vector<8x32xf32>
    %522 = arith.addf %519, %521 : vector<8x32xf32>
    %523 = math.tanh %522 : vector<8x32xf32>
    %524 = arith.mulf %471, %512 : vector<8x32xf32>
    %525 = arith.addf %469, %524 : vector<8x32xf32>
    %526 = arith.mulf %525, %457 : vector<8x32xf32>
    %cst_271 = arith.constant 1.000000e+00 : f32
    %527 = vector.broadcast %cst_271 : f32 to vector<8x32xf32>
    %528 = arith.subf %527, %512 : vector<8x32xf32>
    %529 = arith.mulf %528, %523 : vector<8x32xf32>
    %530 = arith.mulf %473, %529 : vector<8x32xf32>
    %531 = arith.addf %526, %530 : vector<8x32xf32>
    %532 = tpu.concatenate %501, %531 in 1 : vector<8x32xf32>, vector<8x32xf32> -> vector<8x64xf32>
    %c6_272 = arith.constant 6 : index
    %c0_273 = arith.constant 0 : index
    %c0_274 = arith.constant 0 : index
    %533 = vector.load %arg11[%c6_272, %c0_273, %c0_274] : memref<8x8x64xf32, #tpu.memory_space<vmem>>, vector<1x8x64xf32>
    %534 = vector.shape_cast %533 : vector<1x8x64xf32> to vector<8x64xf32>
    %535 = vector.shape_cast %532 : vector<8x64xf32> to vector<1x8x64xf32>
    tpu.vector_store %arg11[%c6_272, %c0_273, %c0_274], %535 {strides = array<i32>} : memref<8x8x64xf32, #tpu.memory_space<vmem>>, vector<1x8x64xf32>,
    %c7 = arith.constant 7 : index
    %c0_275 = arith.constant 0 : index
    %c0_276 = arith.constant 0 : index
    %c0_277 = arith.constant 0 : index
    %536 = vector.load %arg2[%c7, %c0_275, %c0_276, %c0_277] : memref<8x6x8x32xf32, #tpu.memory_space<vmem>>, vector<1x1x8x32xf32>
    %537 = vector.shape_cast %536 : vector<1x1x8x32xf32> to vector<8x32xf32>
    %c7_278 = arith.constant 7 : index
    %c1_279 = arith.constant 1 : index
    %c0_280 = arith.constant 0 : index
    %c0_281 = arith.constant 0 : index
    %538 = vector.load %arg2[%c7_278, %c1_279, %c0_280, %c0_281] : memref<8x6x8x32xf32, #tpu.memory_space<vmem>>, vector<1x1x8x32xf32>
    %539 = vector.shape_cast %538 : vector<1x1x8x32xf32> to vector<8x32xf32>
    %c7_282 = arith.constant 7 : index
    %c2_283 = arith.constant 2 : index
    %c0_284 = arith.constant 0 : index
    %c0_285 = arith.constant 0 : index
    %540 = vector.load %arg2[%c7_282, %c2_283, %c0_284, %c0_285] : memref<8x6x8x32xf32, #tpu.memory_space<vmem>>, vector<1x1x8x32xf32>
    %541 = vector.shape_cast %540 : vector<1x1x8x32xf32> to vector<8x32xf32>
    %c7_286 = arith.constant 7 : index
    %c3_287 = arith.constant 3 : index
    %c0_288 = arith.constant 0 : index
    %c0_289 = arith.constant 0 : index
    %542 = vector.load %arg2[%c7_286, %c3_287, %c0_288, %c0_289] : memref<8x6x8x32xf32, #tpu.memory_space<vmem>>, vector<1x1x8x32xf32>
    %543 = vector.shape_cast %542 : vector<1x1x8x32xf32> to vector<8x32xf32>
    %c7_290 = arith.constant 7 : index
    %c4_291 = arith.constant 4 : index
    %c0_292 = arith.constant 0 : index
    %c0_293 = arith.constant 0 : index
    %544 = vector.load %arg2[%c7_290, %c4_291, %c0_292, %c0_293] : memref<8x6x8x32xf32, #tpu.memory_space<vmem>>, vector<1x1x8x32xf32>
    %545 = vector.shape_cast %544 : vector<1x1x8x32xf32> to vector<8x32xf32>
    %c7_294 = arith.constant 7 : index
    %c5_295 = arith.constant 5 : index
    %c0_296 = arith.constant 0 : index
    %c0_297 = arith.constant 0 : index
    %546 = vector.load %arg2[%c7_294, %c5_295, %c0_296, %c0_297] : memref<8x6x8x32xf32, #tpu.memory_space<vmem>>, vector<1x1x8x32xf32>
    %547 = vector.shape_cast %546 : vector<1x1x8x32xf32> to vector<8x32xf32>
    %548 = arith.mulf %537, %531 : vector<8x32xf32>
    %549 = tpu.concatenate %548, %501 in 1 : vector<8x32xf32>, vector<8x32xf32> -> vector<8x64xf32>
    %550 = vector.extract_strided_slice %9 {offsets = [56, 0], sizes = [8, 96], strides = [1, 1]} : vector<64x96xf32> to vector<8x96xf32>
    %cst_298 = arith.constant dense<0.000000e+00> : vector<8x96xf32>
    %551 = tpu.matmul %549, %0, %cst_298 {dimension_numbers = #tpu.dot_dimension_numbers<[1], [0], [0], [1], [0, 0, 1, 1], [], []>} : vector<8x64xf32>, vector<64x96xf32>, vector<8x96xf32> -> vector<8x96xf32>
    %552 = arith.addf %550, %551 : vector<8x96xf32>
    %553 = vector.extract_strided_slice %552 {offsets = [0, 0], sizes = [8, 32], strides = [1, 1]} : vector<8x96xf32> to vector<8x32xf32>
    %554 = arith.negf %553 : vector<8x32xf32>
    %555 = math.exp %554 : vector<8x32xf32>
    %cst_299 = arith.constant 1.000000e+00 : f32
    %556 = vector.broadcast %cst_299 : f32 to vector<8x32xf32>
    %557 = arith.addf %556, %555 : vector<8x32xf32>
    %558 = arith.divf %556, %557 : vector<8x32xf32>
    %559 = vector.extract_strided_slice %552 {offsets = [0, 32], sizes = [8, 32], strides = [1, 1]} : vector<8x96xf32> to vector<8x32xf32>
    %560 = arith.negf %559 : vector<8x32xf32>
    %561 = math.exp %560 : vector<8x32xf32>
    %cst_300 = arith.constant 1.000000e+00 : f32
    %562 = vector.broadcast %cst_300 : f32 to vector<8x32xf32>
    %563 = arith.addf %562, %561 : vector<8x32xf32>
    %564 = arith.divf %562, %563 : vector<8x32xf32>
    %565 = vector.extract_strided_slice %552 {offsets = [0, 64], sizes = [8, 32], strides = [1, 1]} : vector<8x96xf32> to vector<8x32xf32>
    %566 = arith.mulf %564, %501 : vector<8x32xf32>
    %cst_301 = arith.constant dense<0.000000e+00> : vector<8x32xf32>
    %567 = tpu.matmul %566, %1, %cst_301 {dimension_numbers = #tpu.dot_dimension_numbers<[1], [0], [0], [1], [0, 0, 1, 1], [], []>} : vector<8x32xf32>, vector<32x32xf32>, vector<8x32xf32> -> vector<8x32xf32>
    %568 = arith.addf %565, %567 : vector<8x32xf32>
    %569 = math.tanh %568 : vector<8x32xf32>
    %cst_302 = arith.constant 1.000000e+00 : f32
    %570 = vector.broadcast %cst_302 : f32 to vector<8x32xf32>
    %571 = arith.subf %570, %558 : vector<8x32xf32>
    %572 = arith.mulf %571, %569 : vector<8x32xf32>
    %573 = arith.mulf %558, %501 : vector<8x32xf32>
    %574 = arith.mulf %539, %573 : vector<8x32xf32>
    %575 = arith.addf %572, %574 : vector<8x32xf32>
    %576 = arith.mulf %541, %575 : vector<8x32xf32>
    %577 = tpu.concatenate %576, %531 in 1 : vector<8x32xf32>, vector<8x32xf32> -> vector<8x64xf32>
    %578 = vector.extract_strided_slice %15 {offsets = [56, 0], sizes = [8, 96], strides = [1, 1]} : vector<64x96xf32> to vector<8x96xf32>
    %cst_303 = arith.constant dense<0.000000e+00> : vector<8x96xf32>
    %579 = tpu.matmul %577, %2, %cst_303 {dimension_numbers = #tpu.dot_dimension_numbers<[1], [0], [0], [1], [0, 0, 1, 1], [], []>} : vector<8x64xf32>, vector<64x96xf32>, vector<8x96xf32> -> vector<8x96xf32>
    %580 = arith.addf %578, %579 : vector<8x96xf32>
    %581 = vector.extract_strided_slice %580 {offsets = [0, 0], sizes = [8, 32], strides = [1, 1]} : vector<8x96xf32> to vector<8x32xf32>
    %582 = arith.negf %581 : vector<8x32xf32>
    %583 = math.exp %582 : vector<8x32xf32>
    %cst_304 = arith.constant 1.000000e+00 : f32
    %584 = vector.broadcast %cst_304 : f32 to vector<8x32xf32>
    %585 = arith.addf %584, %583 : vector<8x32xf32>
    %586 = arith.divf %584, %585 : vector<8x32xf32>
    %587 = vector.extract_strided_slice %580 {offsets = [0, 32], sizes = [8, 32], strides = [1, 1]} : vector<8x96xf32> to vector<8x32xf32>
    %588 = arith.negf %587 : vector<8x32xf32>
    %589 = math.exp %588 : vector<8x32xf32>
    %cst_305 = arith.constant 1.000000e+00 : f32
    %590 = vector.broadcast %cst_305 : f32 to vector<8x32xf32>
    %591 = arith.addf %590, %589 : vector<8x32xf32>
    %592 = arith.divf %590, %591 : vector<8x32xf32>
    %593 = vector.extract_strided_slice %580 {offsets = [0, 64], sizes = [8, 32], strides = [1, 1]} : vector<8x96xf32> to vector<8x32xf32>
    %594 = arith.mulf %592, %531 : vector<8x32xf32>
    %cst_306 = arith.constant dense<0.000000e+00> : vector<8x32xf32>
    %595 = tpu.matmul %594, %3, %cst_306 {dimension_numbers = #tpu.dot_dimension_numbers<[1], [0], [0], [1], [0, 0, 1, 1], [], []>} : vector<8x32xf32>, vector<32x32xf32>, vector<8x32xf32> -> vector<8x32xf32>
    %596 = arith.addf %593, %595 : vector<8x32xf32>
    %597 = math.tanh %596 : vector<8x32xf32>
    %598 = arith.mulf %545, %586 : vector<8x32xf32>
    %599 = arith.addf %543, %598 : vector<8x32xf32>
    %600 = arith.mulf %599, %531 : vector<8x32xf32>
    %cst_307 = arith.constant 1.000000e+00 : f32
    %601 = vector.broadcast %cst_307 : f32 to vector<8x32xf32>
    %602 = arith.subf %601, %586 : vector<8x32xf32>
    %603 = arith.mulf %602, %597 : vector<8x32xf32>
    %604 = arith.mulf %547, %603 : vector<8x32xf32>
    %605 = arith.addf %600, %604 : vector<8x32xf32>
    %606 = tpu.concatenate %575, %605 in 1 : vector<8x32xf32>, vector<8x32xf32> -> vector<8x64xf32>
    %c7_308 = arith.constant 7 : index
    %c0_309 = arith.constant 0 : index
    %c0_310 = arith.constant 0 : index
    %607 = vector.load %arg11[%c7_308, %c0_309, %c0_310] : memref<8x8x64xf32, #tpu.memory_space<vmem>>, vector<1x8x64xf32>
    %608 = vector.shape_cast %607 : vector<1x8x64xf32> to vector<8x64xf32>
    %609 = vector.shape_cast %606 : vector<8x64xf32> to vector<1x8x64xf32>
    tpu.vector_store %arg11[%c7_308, %c0_309, %c0_310], %609 {strides = array<i32>} : memref<8x8x64xf32, #tpu.memory_space<vmem>>, vector<1x8x64xf32>,
    return
  }
}

</mosaic_0001>

<bundles_post_ra>
// kernel: hmgru_pallas.1
= control target key start
LH: loop header
LB: loop body
LE: loop exit
PB: predicated region body
PF: predicated region fallthrough
CT: control target
= control target key end

     0   :  { %vm225_vm0 = vcmask 64512   ;;  %v4590_v9 = vmov 0.0|0.0   ;;  %vm79_vm1 = vcmask 130048   ;;  %vm367_vm2 = vcmask 261120   ;;  %s4593_s18 = smov 96   ;;  %s4594_s19 = smov 64   ;;  %s5529_s7 = inlined_call_operand.vmem [shape: f32[8,96], index: 7, kind: input, shape index: {}]   ;;  %s5530_s1 = inlined_call_operand.vmem [shape: f32[64,8], index: 1, kind: input, shape index: {}]   ;;  %s5531_s5 = inlined_call_operand.vmem [shape: f32[64,96], index: 5, kind: input, shape index: {}]   ;;  %s5532_s3 = inlined_call_operand.vmem [shape: f32[16,96], index: 3, kind: input, shape index: {}]   ;;  %s5533_s0 = inlined_call_operand.vmem [shape: f32[64,16], index: 0, kind: input, shape index: {}]   ;;  %s5534_s2 = inlined_call_operand.vmem [shape: f32[8,6,8,32], index: 2, kind: input, shape index: {}]   ;;  %s5535_s6 = inlined_call_operand.vmem [shape: f32[32,32], index: 6, kind: input, shape index: {}]   ;;  %s5536_s8 = inlined_call_operand.vmem [shape: f32[1,96], index: 8, kind: input, shape index: {}]   ;;  %s5537_s4 = inlined_call_operand.vmem [shape: f32[1,96], index: 4, kind: input, shape index: {}]   ;;  %s5538_s9 = inlined_call_operand.vmem [shape: f32[64,96], index: 9, kind: input, shape index: {}]   ;;  %s5539_s10 = inlined_call_operand.vmem [shape: f32[32,32], index: 10, kind: input, shape index: {}]   ;;  %s5540_s11 = inlined_call_operand.vmem [shape: f32[8,8,64], index: 11, kind: output, shape index: {}]  }
   0x1   :  { %v217_v0 = vld [vmem:[%s5529_s7] sm:$0xff]  ;;  %v210_v2 = vld [vmem:[%s5530_s1 + $0x8] sm:$0xff]  ;;  %v211_v5 = vld [vmem:[%s5530_s1 + $0x10] sm:$0xff]  ;;  %vm4591_vm3 = vmmov 0   ;;  %v4592_v29 = vmov 0.0   ;;  %vm369_vm4 = vcmask 523264  }
   0x2   :  { %v209_v1 = vld [vmem:[%s5530_s1] sm:$0xff]  ;;  %3701 = vmatprep.subr.mxu1 %v217_v0  ;;  %v39_v4 = vld [vmem:[%s5531_s5 + $0x8] sm:$0xff]  ;;  %v40_v7 = vld [vmem:[%s5531_s5 + $0x10] sm:$0xff] }
   0x3   :  { %3703 = vmatprep.mubr.msk.f32.mxu1 %vm225_vm0, %v209_v1  ;;  %v38_v3 = vld [vmem:[%s5531_s5] sm:$0xff]  ;;  %3702 = vmatpush3.msra.mxu1 %v217_v0  ;;  %v41_v8 = vld [vmem:[%s5531_s5 + $0x18] sm:$0xff]  ;;  %v71_v14 = vld [vmem:[%s5532_s3 + $0x8] sm:$0xff] }
   0x4   :  { %v4675_v6 = vpack.c.bf16 %v39_v4, %v38_v3  ;;  %3704 = vmatmul.mubr.msk.f32.vlgmr.msra.gmra.mrb[0].mxu1 %vm225_vm0, %v210_v2  ;;  %4199 = vmatprep.subr.bf16.mxu1 %v4590_v9  ;;  %v70_v10 = vld [vmem:[%s5532_s3] sm:$0xff]  ;;  %v212_v11 = vld [vmem:[%s5530_s1 + $0x18] sm:$0xff]  ;;  %v4693_v12 = vpack.c.bf16 %v41_v8, %v40_v7  ;;  %v43_v17 = vld [vmem:[%s5531_s5 + $0x28] sm:$0xff] }
   0x5   :  { %3706 = vmatprep.mubr.msk.f32.mxu1 %vm225_vm0, %v211_v5  ;;  %v213_v13 = vld [vmem:[%s5530_s1 + $0x20] sm:$0xff]  ;;  %v4195_v15 = vpack.c.bf16 %v71_v14, %v70_v10  ;;  %v214_v19 = vld [vmem:[%s5530_s1 + $0x28] sm:$0xff]  ;;  %v215_v21 = vld [vmem:[%s5530_s1 + $0x30] sm:$0xff] }
   0x6   :  { %4201 = vmatpush3.bf16.msra.mxu1 %v4675_v6  ;;  %v42_v16 = vld [vmem:[%s5531_s5 + $0x20] sm:$0xff]  ;;  %v44_v22 = vld [vmem:[%s5531_s5 + $0x30] sm:$0xff]  ;;  %v45_v23 = vld [vmem:[%s5531_s5 + $0x38] sm:$0xff] }
   0x7   :  { %4202 = vmatprep.subr.bf16.mxu1 %v4590_v9  ;;  %v62_v18 = vld [vmem:[%s5533_s0] sm:$0xff]  ;;  %4196 = vmatprep.subr.bf16.mxu0 %v4195_v15  ;;  %v4718_v20 = vpack.c.bf16 %v43_v17, %v42_v16  ;;  %v63_v25 = vld [vmem:[%s5533_s0 + $0x8] sm:$0xff]  ;;  %v216_v26 = vld [vmem:[%s5530_s1 + $0x38] sm:$0xff]  ;;  %v4743_v27 = vpack.c.bf16 %v45_v23, %v44_v22 }
   0x8   :  { %3689 = vmatprep.mubr.msk.f32.mxu0 %vm79_vm1, %v62_v18  ;;  %3707 = vmatmul.mubr.msk.f32.gmra.mrb[2].mxu1 %vm225_vm0, %v212_v11  ;;  %v355_v24 = vld [vmem:[%s5534_s2] sm:$0xff]  ;;  %v64_v31 = vld [vmem:[%s5533_s0 + $0x10] sm:$0xff]  ;;  %v65_v32 = vld [vmem:[%s5533_s0 + $0x18] sm:$0xff] }
   0x9   :  { %3709 = vmatprep.mubr.msk.f32.mxu1 %vm225_vm0, %v213_v13  ;;  %4198 = vmatpush3.bf16.msra.mxu0 %v4195_v15  ;;  %v366_v28 = vmul.f32 0.0, %v355_v24  ;;  %v66_v33 = vld [vmem:[%s5533_s0 + $0x20] sm:$0xff]  ;;  %v47_v35 = vld [vmem:[%s5535_s6 + $0x8] sm:$0xff]  ;;  %v48_v37 = vld [vmem:[%s5535_s6 + $0x10] sm:$0xff] }
   0xa   :  { %4204 = vmatpush3.bf16.msra.mxu1 %v4693_v12  ;;  %4211 = vmatprep.subr.bf16.mxu0 %v4590_v9  ;;  %v46_v34 = vld [vmem:[%s5535_s6] sm:$0xff]  ;;  %v49_v38 = vld [vmem:[%s5535_s6 + $0x18] sm:$0xff]  ;;  %v67_v39 = vld [vmem:[%s5533_s0 + $0x28] sm:$0xff] }
   0xb   :  { %4205 = vmatprep.subr.bf16.mxu1 %v4590_v9  ;;  %v368_v30 = vsel %vm367_vm2, %v366_v28, 0.0  ;;  %v4772_v36 = vpack.c.bf16 %v47_v35, %v46_v34  ;;  %v4786_v40 = vpack.c.bf16 %v49_v38, %v48_v37  ;;  %v68_v41 = vld [vmem:[%s5533_s0 + $0x30] sm:$0xff]  ;;  %v69_v42 = vld [vmem:[%s5533_s0 + $0x38] sm:$0xff]  ;;  %v4805_v43 = vld [vmem:[%s5536_s8] ss:$0 sm:$0xff] }
   0xc   :  { %3710 = vmatmul.mubr.msk.f32.gmra.mrb[4].mxu1 %vm225_vm0, %v214_v19  ;;  %3690 = vmatmul.mubr.msk.f32.vlgmr.msra.gmra.mrb[0].mxu0 %vm79_vm1, %v63_v25  ;;  %v4829_v56 = vld [vmem:[%s5537_s4] ss:$0 sm:$0xff]  ;;  %v52_v22 = vld [vmem:[%s5538_s9 + $0x10] sm:$0xff]  ;;  %v53_v24 = vld [vmem:[%s5538_s9 + $0x18] sm:$0xff] }
   0xd   :  { %3712 = vmatprep.mubr.msk.f32.mxu1 %vm225_vm0, %v215_v21  ;;  %3692 = vmatprep.mubr.msk.f32.mxu0 %vm79_vm1, %v64_v31  ;;  %v50_v19 = vld [vmem:[%s5538_s9] sm:$0xff]  ;;  %v51_v21 = vld [vmem:[%s5538_s9 + $0x8] sm:$0xff]  ;;  %v4870_v25 = vpack.c.bf16 %v53_v24, %v52_v22  ;;  %v57_v34 = vld [vmem:[%s5538_s9 + $0x38] sm:$0xff] }
   0xe   :  { %4207 = vmatpush3.bf16.msra.mxu1 %v4718_v20  ;;  %4213 = vmatpush3.bf16.msra.mxu0 %v4772_v36  ;;  %v4864_v23 = vpack.c.bf16 %v51_v21, %v50_v19  ;;  %v55_v28 = vld [vmem:[%s5538_s9 + $0x28] sm:$0xff] }
   0xf   :  { %4208 = vmatprep.subr.bf16.mxu1 %v4590_v9  ;;  %4214 = vmatprep.subr.bf16.mxu0 %v4590_v9  ;;  %v3340_v38 = vld [vmem:[%s5534_s2 + $0x8] sm:$0xff] }
  0x10   :  { %3713 = vmatmul.mubr.msk.f32.gmra.mrb[6].mxu1 %vm225_vm0, %v216_v26  ;;  %3693 = vmatmul.mubr.msk.f32.gmra.mrb[2].mxu0 %vm79_vm1, %v65_v32  ;;  %v54_v26 = vld [vmem:[%s5538_s9 + $0x20] sm:$0xff] }
  0x11   :  { %3731 = vmatprep.mubr.msk.f32.mxu1 %vm4591_vm3, %v4592_v29  ;;  %3695 = vmatprep.mubr.msk.f32.mxu0 %vm79_vm1, %v66_v33  ;;  %v56_v33 = vld [vmem:[%s5538_s9 + $0x30] sm:$0xff] }
  0x12   :  { %4210 = vmatpush3.bf16.msra.mxu1 %v4743_v27  ;;  %4216 = vmatpush3.bf16.msra.mxu0 %v4786_v40  ;;  %v4891_v35 = vpack.c.bf16 %v57_v34, %v56_v33  ;;  %v3344_v34 = vld [vmem:[%s5534_s2 + $0x28] sm:$0xff] }
  0x13   :  { %4217 = vmatprep.subr.bf16.mxu1 %v4590_v9  ;;  %4229 = vmatprep.subr.bf16.mxu0 %v4590_v9 }
  0x14   :  { %3696 = vmatmul.mubr.msk.f32.gmra.mrb[4].mxu0 %vm79_vm1, %v67_v39 }
  0x15   :  { %3732 = vmatmul.mubr.msk.f32.vlgmr.msra.gmra.mrb[8].mxu1 %vm369_vm4, %v368_v30  ;;  %3698 = vmatprep.mubr.msk.f32.mxu0 %vm79_vm1, %v68_v41  ;;  %v4881_v30 = vpack.c.bf16 %v55_v28, %v54_v26  ;;  %v3343_v26 = vld [vmem:[%s5534_s2 + $0x20] sm:$0xff] }
  0x16   :  { %3761 = vmatprep.mubr.msk.f32.mxu1 %vm4591_vm3, %v4592_v29  ;;  %4219 = vmatpush3.bf16.msra.mxu1 %v4864_v23 }
  0x17   :  { %4220 = vmatprep.subr.bf16.mxu1 %v4590_v9 }
  0x18   :  { %3699 = vmatmul.mubr.msk.f32.gmra.mrb[6].mxu0 %vm79_vm1, %v69_v42 }
  0x19   :  { %3742 = vmatprep.mubr.msk.f32.mxu0 %vm4591_vm3, %v4592_v29 }
  0x1a   :  { %4222 = vmatpush3.bf16.msra.mxu1 %v4870_v25 }
  0x1b   :  { %4223 = vmatprep.subr.bf16.mxu1 %v4590_v9 }
  0x1e   :  { %4225 = vmatpush3.bf16.msra.mxu1 %v4881_v30 }
  0x1f   :  { %4226 = vmatprep.subr.bf16.mxu1 %v4590_v9 }
  0x22   :  { %4228 = vmatpush3.bf16.msra.mxu1 %v4891_v35 }
  0x23   :  { %4247 = vmatprep.subr.bf16.mxu1 %v4590_v9 }
  0xd7   :  { %v3705_v44 = vpop.f32.mrb[0].mxu1 }
  0xd8   :  { %v4808_v45 = vadd.f32 %v3705_v44, %v4805_v43  ;;  %v4810_v46 = vpop.f32.mrb[1].mxu1 }
  0xdb   :  { %v3708_v47 = vpop.f32.mrb[2].mxu1 }
  0xdc   :  { %v4813_v48 = vadd.f32 %v3708_v47, %v4805_v43  ;;  %v326_v49 = vpop.f32.mrb[3].mxu1  ;;  %v3341_v47 = vld [vmem:[%s5534_s2 + $0x10] sm:$0xff] }
  0xdd   :  { %v4816_v50 = vadd.f32 %v4805_v43, %v326_v49 }
  0xdf   :  { %v3711_v51 = vpop.f32.mrb[4].mxu1  ;;  %v4824_v55 = vpop.f32.mrb[0].mxu0 }
  0xe0   :  { %v4819_v52 = vadd.f32 %v3711_v51, %v4805_v43  ;;  %v336_v53 = vpop.f32.mrb[5].mxu1  ;;  %v170_v57 = vpop.f32.mrb[1].mxu0 }
  0xe1   :  { %v4822_v54 = vadd.f32 %v4805_v43, %v336_v53  ;;  %v171_v61 = vadd.f32 %v4829_v56, %v170_v57  ;;  %v58_v57 = vld [vmem:[%s5539_s10] sm:$0xff] }
  0xe3   :  { %v3714_v58 = vpop.f32.mrb[6].mxu1  ;;  %v4839_v8 = vpop.f32.mrb[2].mxu0 }
  0xe4   :  { %v4832_v59 = vadd.f32 %v3714_v58, %v4805_v43  ;;  %v346_v60 = vpop.f32.mrb[7].mxu1  ;;  %v4841_v10 = vpop.f32.mrb[3].mxu0  ;;  %v59_v58 = vld [vmem:[%s5539_s10 + $0x8] sm:$0xff] }
  0xe5   :  { %v4836_v62 = vadd.f32 %v4805_v43, %v346_v60  ;;  %v60_v60 = vld [vmem:[%s5539_s10 + $0x10] sm:$0xff] }
  0xe7   :  { %v4843_v11 = vpop.f32.mrb[4].mxu0 }
  0xe8   :  { %v439_v63 = vpop.f32.mrb[8].mxu1  ;;  %v4845_v13 = vpop.f32.mrb[5].mxu0 }
  0xe9   :  { %v443_v0 = vadd.f32 %v439_v63, %v171_v61  ;;  %v3733_v1 = vpop.f32.mrb[9].mxu1  ;;  %v4922_v61 = vpack.c.bf16 %v59_v58, %v58_v57  ;;  %v61_v63 = vld [vmem:[%s5539_s10 + $0x18] sm:$0xff]  ;;  %s4595_s10 = smov 32   ;;  %v176_v57 = vadd.f32 %v4824_v55, %v4829_v56 }
  0xea   :  { %v317_v1 = vadd.f32 %v4805_v43, %v4810_v46 }
  0xeb   :  { %v3346_v2 = vmul.f32 -1.442695, %v443_v0  ;;  %v4847_v14 = vpop.f32.mrb[6].mxu0 }
  0xec   :  { %v4849_v15 = vpop.f32.mrb[7].mxu0 }
  0xed   :  { %4493 = vpow2.f32 %v3346_v2 }
  0xf7   :  { %v4494_v3 = vpop.eup %4493 }
  0xf8   :  { %v447_v4 = vadd.f32 1.0, %v4494_v3 }
  0xfa   :  { %4495 = vrcp.f32 %v447_v4 }
 0x104   :  { %v4496_v5 = vpop.eup %4495 }
 0x105   :  { %v450_v7 = vmul.f32 0.0, %v4496_v5  ;;  %v532_v39 = vsub.f32 1.0, %v4496_v5 }
 0x107   :  { %452 = vrot.lane.b32.xlu0 %v450_v7, %s4593_s18  ;;  %v538_v42 = vmul.f32 %v3340_v38, %v450_v7 }
 0x179   :  { %v453_v16 = vpop.permute.xlu0 %452 }
 0x17a   :  { %3743 = vmatmul.mubr.msk.f32.vlgmr.msra.gmra.mrb[8].mxu0 %vm367_vm2, %v453_v16 }
 0x17b   :  { %3772 = vmatprep.mubr.msk.f32.mxu0 %vm4591_vm3, %v4592_v29  ;;  %4231 = vmatpush3.bf16.msra.mxu0 %v4922_v61 }
 0x17c   :  { %4232 = vmatprep.subr.bf16.mxu0 %v4590_v9 }
 0x24d   :  { %v522_v17 = vpop.f32.mrb[8].mxu0 }
 0x24e   :  { %527 = vrot.lane.b32.xlu0 %v522_v17, %s4594_s19  ;;  %v3744_v18 = vpop.f32.mrb[9].mxu0 }
 0x2c0   :  { %v528_v31 = vpop.permute.xlu0 %527 }
 0x2c1   :  { %v530_v32 = vadd.f32 %v528_v31, %v443_v0  ;;  %v4928_v0 = vpack.c.bf16 %v61_v63, %v60_v60  ;;  %v3342_v31 = vld [vmem:[%s5534_s2 + $0x18] sm:$0xff] }
 0x2c3   :  { %4497 = vtanh.f32 %v530_v32  ;;  %4234 = vmatpush3.bf16.msra.mxu0 %v4928_v0 }
 0x2c4   :  { %4235 = vmatprep.subr.bf16.mxu0 %v4590_v9 }
 0x2cd   :  { %v4498_v37 = vpop.eup %4497 }
 0x2ce   :  { %534 = vrot.lane.b32.xlu1 %v4498_v37, %s4594_s19 }
 0x340   :  { %v535_v41 = vpop.permute.xlu1 %534 }
 0x341   :  { %v537_v44 = vmul.f32 %v535_v41, %v532_v39 }
 0x343   :  { %v4902_v49 = vadd.f32 %v538_v42, %v537_v44  ;;  %v3351_v42 = vld [vmem:[%s5534_s2 + $0x30] sm:$0xff] }
 0x345   :  { %v540_v51 = vmul.f32 %v3341_v47, %v4902_v49 }
 0x347   :  { %v541_v53 = vsel %vm367_vm2, %v540_v51, 0.0 }
 0x348   :  { %3762 = vmatmul.mubr.msk.f32.vlgmr.msra.gmra.mrb[10].mxu1 %vm369_vm4, %v541_v53 }
 0x349   :  { %4249 = vmatpush3.bf16.msra.mxu1 %v4772_v36  ;;  %3802 = vmatprep.mubr.msk.f32.mxu1 %vm4591_vm3, %v4592_v29 }
 0x34a   :  { %4250 = vmatprep.subr.bf16.mxu1 %v4590_v9 }
 0x34d   :  { %4252 = vmatpush3.bf16.msra.mxu1 %v4786_v40 }
 0x34e   :  { %4253 = vmatprep.subr.bf16.mxu1 %v4590_v9 }
 0x41b   :  { %v611_v2 = vpop.f32.mrb[10].mxu1 }
 0x41c   :  { %v615_v3 = vadd.f32 %v611_v2, %v317_v1  ;;  %v3763_v4 = vpop.f32.mrb[11].mxu1 }
 0x41e   :  { %v3349_v5 = vmul.f32 -1.442695, %v615_v3 }
 0x420   :  { %4499 = vpow2.f32 %v3349_v5 }
 0x42a   :  { %v4500_v7 = vpop.eup %4499 }
 0x42b   :  { %v619_v16 = vadd.f32 1.0, %v4500_v7 }
 0x42d   :  { %4501 = vrcp.f32 %v619_v16 }
 0x437   :  { %v4502_v17 = vpop.eup %4501 }
 0x438   :  { %v622_v18 = vmul.f32 0.0, %v4502_v17  ;;  %v704_v28 = vmul.f32 %v4502_v17, %v3343_v26  ;;  %v707_v33 = vsub.f32 1.0, %v4502_v17 }
 0x43a   :  { %624 = vrot.lane.b32.xlu1 %v622_v18, %s4593_s18  ;;  %v705_v32 = vadd.f32 %v3342_v31, %v704_v28 }
 0x43c   :  { %v706_v39 = vmul.f32 0.0, %v705_v32  ;;  %v3353_v32 = vld [vmem:[%s5534_s2 + $0x40] sm:$0xff] }
 0x4ac   :  { %v625_v19 = vpop.permute.xlu1 %624 }
 0x4ad   :  { %3773 = vmatmul.mubr.msk.f32.vlgmr.msra.gmra.mrb[10].mxu0 %vm367_vm2, %v625_v19 }
 0x4ae   :  { %4237 = vmatpush3.bf16.msra.mxu0 %v4675_v6  ;;  %3791 = vmatprep.mubr.msk.f32.mxu0 %vm4591_vm3, %v4592_v29 }
 0x4af   :  { %4238 = vmatprep.subr.bf16.mxu0 %v4590_v9 }
 0x4b2   :  { %4240 = vmatpush3.bf16.msra.mxu0 %v4693_v12 }
 0x4b3   :  { %4241 = vmatprep.subr.bf16.mxu0 %v4590_v9 }
 0x4b6   :  { %4243 = vmatpush3.bf16.msra.mxu0 %v4718_v20 }
 0x4b7   :  { %4244 = vmatprep.subr.bf16.mxu0 %v4590_v9 }
 0x4ba   :  { %4246 = vmatpush3.bf16.msra.mxu0 %v4743_v27 }
 0x4bb   :  { %4265 = vmatprep.subr.bf16.mxu0 %v4590_v9 }
 0x580   :  { %v694_v43 = vpop.f32.mrb[10].mxu0 }
 0x581   :  { %699 = vrot.lane.b32.xlu0 %v694_v43, %s4594_s19  ;;  %v3774_v46 = vpop.f32.mrb[11].mxu0 }
 0x585   :  { %735 = vrot.lane.b32.xlu0 %v4902_v49, %s4595_s10 }
 0x5f3   :  { %v700_v21 = vpop.permute.xlu0 %699 }
 0x5f4   :  { %v702_v22 = vadd.f32 %v700_v21, %v615_v3 }
 0x5f6   :  { %4503 = vtanh.f32 %v702_v22  ;;  %v3352_v22 = vld [vmem:[%s5534_s2 + $0x38] sm:$0xff] }
 0x5f7   :  { %v736_v51 = vpop.permute.xlu0 %735 }
 0x600   :  { %v4504_v24 = vpop.eup %4503 }
 0x601   :  { %709 = vrot.lane.b32.xlu1 %v4504_v24, %s4594_s19 }
 0x673   :  { %v710_v37 = vpop.permute.xlu1 %709 }
 0x674   :  { %v712_v38 = vmul.f32 %v710_v37, %v707_v33 }
 0x676   :  { %v713_v41 = vmul.f32 %v3344_v34, %v712_v38 }
 0x678   :  { %v4963_v44 = vadd.f32 %v713_v41, %v706_v39 }
 0x67a   :  { %v733_v47 = vmul.f32 %v3351_v42, %v4963_v44 }
 0x67c   :  { %v738_v53 = vsel %vm367_vm2, %v733_v47, %v736_v51 }
 0x67d   :  { %3792 = vmatmul.mubr.msk.f32.vlgmr.msra.gmra.mrb[12].mxu0 %vm369_vm4, %v738_v53 }
 0x67e   :  { %4267 = vmatpush3.bf16.msra.mxu0 %v4922_v61  ;;  %3832 = vmatprep.mubr.msk.f32.mxu0 %vm4591_vm3, %v4592_v29 }
 0x67f   :  { %4268 = vmatprep.subr.bf16.mxu0 %v4590_v9 }
 0x682   :  { %4270 = vmatpush3.bf16.msra.mxu0 %v4928_v0 }
 0x683   :  { %4271 = vmatprep.subr.bf16.mxu0 %v4590_v9 }
 0x750   :  { %v808_v58 = vpop.f32.mrb[12].mxu0 }
 0x751   :  { %v812_v60 = vadd.f32 %v808_v58, %v176_v57  ;;  %v3793_v63 = vpop.f32.mrb[13].mxu0 }
 0x753   :  { %v3358_v1 = vmul.f32 -1.442695, %v812_v60 }
 0x755   :  { %4505 = vpow2.f32 %v3358_v1 }
 0x75f   :  { %v4506_v2 = vpop.eup %4505 }
 0x760   :  { %v816_v3 = vadd.f32 1.0, %v4506_v2  ;;  %v3355_v2 = vld [vmem:[%s5534_s2 + $0x50] sm:$0xff] }
 0x762   :  { %4507 = vrcp.f32 %v816_v3 }
 0x76c   :  { %v4508_v4 = vpop.eup %4507 }
 0x76d   :  { %v819_v5 = vmul.f32 %v4508_v4, %v736_v51  ;;  %v907_v21 = vmul.f32 %v4508_v4, %v4902_v49  ;;  %v901_v24 = vsub.f32 1.0, %v4508_v4  ;;  %v3354_v4 = vld [vmem:[%s5534_s2 + $0x48] sm:$0xff] }
 0x76f   :  { %821 = vrot.lane.b32.xlu1 %v819_v5, %s4593_s18  ;;  %v908_v28 = vmul.f32 %v3352_v22, %v907_v21 }
 0x7e1   :  { %v822_v7 = vpop.permute.xlu1 %821 }
 0x7e2   :  { %3803 = vmatmul.mubr.msk.f32.vlgmr.msra.gmra.mrb[12].mxu1 %vm367_vm2, %v822_v7 }
 0x7e3   :  { %4255 = vmatpush3.bf16.msra.mxu1 %v4864_v23  ;;  %3821 = vmatprep.mubr.msk.f32.mxu1 %vm4591_vm3, %v4592_v29 }
 0x7e4   :  { %4256 = vmatprep.subr.bf16.mxu1 %v4590_v9 }
 0x7e7   :  { %4258 = vmatpush3.bf16.msra.mxu1 %v4870_v25 }
 0x7e8   :  { %4259 = vmatprep.subr.bf16.mxu1 %v4590_v9 }
 0x7eb   :  { %4261 = vmatpush3.bf16.msra.mxu1 %v4881_v30 }
 0x7ec   :  { %4262 = vmatprep.subr.bf16.mxu1 %v4590_v9 }
 0x7ef   :  { %4264 = vmatpush3.bf16.msra.mxu1 %v4891_v35 }
 0x7f0   :  { %4283 = vmatprep.subr.bf16.mxu1 %v4590_v9 }
 0x8b5   :  { %v891_v55 = vpop.f32.mrb[12].mxu1 }
 0x8b6   :  { %896 = vrot.lane.b32.xlu0 %v891_v55, %s4594_s19  ;;  %v3804_v16 = vpop.f32.mrb[13].mxu1  ;;  %v3356_v55 = vld [vmem:[%s5534_s2 + $0x58] sm:$0xff] }
 0x8ba   :  { %716 = vrot.lane.b32.xlu0 %v4963_v44, %s4595_s10 }
 0x928   :  { %v897_v17 = vpop.permute.xlu0 %896 }
 0x929   :  { %v899_v18 = vadd.f32 %v897_v17, %v812_v60 }
 0x92b   :  { %4509 = vtanh.f32 %v899_v18 }
 0x92c   :  { %v717_v19 = vpop.permute.xlu0 %716 }
 0x92d   :  { %v719_v43 = vsel %vm367_vm2, %v4902_v49, %v717_v19 }
 0x92e   :  { %720 = vst.msk [vmem:[%s5540_s11] sm:$0xff] %vm369_vm4, %v719_v43  ;;  %v3364_v43 = vld [vmem:[%s5534_s2 + $0x60] sm:$0xff] }
 0x935   :  { %v4510_v46 = vpop.eup %4509 }
 0x936   :  { %903 = vrot.lane.b32.xlu1 %v4510_v46, %s4594_s19 }
 0x9a8   :  { %v904_v26 = vpop.permute.xlu1 %903 }
 0x9a9   :  { %v906_v31 = vmul.f32 %v904_v26, %v901_v24 }
 0x9ab   :  { %v5005_v33 = vadd.f32 %v908_v28, %v906_v31 }
 0x9ad   :  { %v910_v34 = vmul.f32 %v3353_v32, %v5005_v33 }
 0x9af   :  { %v911_v37 = vsel %vm367_vm2, %v910_v34, %v717_v19 }
 0x9b0   :  { %3822 = vmatmul.mubr.msk.f32.vlgmr.msra.gmra.mrb[14].mxu1 %vm369_vm4, %v911_v37 }
 0x9b1   :  { %4285 = vmatpush3.bf16.msra.mxu1 %v4772_v36  ;;  %3862 = vmatprep.mubr.msk.f32.mxu1 %vm4591_vm3, %v4592_v29 }
 0x9b2   :  { %4286 = vmatprep.subr.bf16.mxu1 %v4590_v9 }
 0x9b5   :  { %4288 = vmatpush3.bf16.msra.mxu1 %v4786_v40 }
 0x9b6   :  { %4289 = vmatprep.subr.bf16.mxu1 %v4590_v9 }
 0xa83   :  { %v981_v49 = vpop.f32.mrb[14].mxu1 }
 0xa84   :  { %v985_v38 = vadd.f32 %v981_v49, %v4808_v45  ;;  %v3823_v39 = vpop.f32.mrb[15].mxu1 }
 0xa86   :  { %v3361_v41 = vmul.f32 -1.442695, %v985_v38 }
 0xa88   :  { %4511 = vpow2.f32 %v3361_v41 }
 0xa92   :  { %v4512_v42 = vpop.eup %4511 }
 0xa93   :  { %v989_v47 = vadd.f32 1.0, %v4512_v42 }
 0xa95   :  { %4513 = vrcp.f32 %v989_v47 }
 0xa9f   :  { %v4514_v51 = vpop.eup %4513 }
 0xaa0   :  { %v992_v53 = vmul.f32 %v4514_v51, %v717_v19  ;;  %v1074_v3 = vmul.f32 %v4514_v51, %v3355_v2  ;;  %v1077_v7 = vsub.f32 1.0, %v4514_v51 }
 0xaa2   :  { %994 = vrot.lane.b32.xlu1 %v992_v53, %s4593_s18  ;;  %v1075_v5 = vadd.f32 %v3354_v4, %v1074_v3  ;;  %v3366_v3 = vld [vmem:[%s5534_s2 + $0x70] sm:$0xff] }
 0xaa4   :  { %v1076_v18 = vmul.f32 %v1075_v5, %v4963_v44  ;;  %v181_v44 = vadd.f32 %v4829_v56, %v4841_v10 }
 0xb14   :  { %v995_v57 = vpop.permute.xlu1 %994 }
 0xb15   :  { %3833 = vmatmul.mubr.msk.f32.vlgmr.msra.gmra.mrb[14].mxu0 %vm367_vm2, %v995_v57 }
 0xb16   :  { %4273 = vmatpush3.bf16.msra.mxu0 %v4675_v6  ;;  %3851 = vmatprep.mubr.msk.f32.mxu0 %vm4591_vm3, %v4592_v29 }
 0xb17   :  { %4274 = vmatprep.subr.bf16.mxu0 %v4590_v9 }
 0xb1a   :  { %4276 = vmatpush3.bf16.msra.mxu0 %v4693_v12 }
 0xb1b   :  { %4277 = vmatprep.subr.bf16.mxu0 %v4590_v9 }
 0xb1e   :  { %4279 = vmatpush3.bf16.msra.mxu0 %v4718_v20 }
 0xb1f   :  { %4280 = vmatprep.subr.bf16.mxu0 %v4590_v9 }
 0xb22   :  { %4282 = vmatpush3.bf16.msra.mxu0 %v4743_v27 }
 0xb23   :  { %4301 = vmatprep.subr.bf16.mxu0 %v4590_v9 }
 0xbe8   :  { %v1064_v45 = vpop.f32.mrb[14].mxu0 }
 0xbe9   :  { %1069 = vrot.lane.b32.xlu0 %v1064_v45, %s4594_s19  ;;  %v3834_v58 = vpop.f32.mrb[15].mxu0 }
 0xbea   :  { %v3365_v58 = vld [vmem:[%s5534_s2 + $0x68] sm:$0xff] }
 0xbed   :  { %1106 = vrot.lane.b32.xlu0 %v5005_v33, %s4595_s10 }
 0xc5b   :  { %v1070_v60 = vpop.permute.xlu0 %1069 }
 0xc5c   :  { %v1072_v63 = vadd.f32 %v1070_v60, %v985_v38 }
 0xc5e   :  { %4515 = vtanh.f32 %v1072_v63 }
 0xc5f   :  { %v1107_v22 = vpop.permute.xlu0 %1106 }
 0xc68   :  { %v4516_v1 = vpop.eup %4515 }
 0xc69   :  { %1079 = vrot.lane.b32.xlu1 %v4516_v1, %s4594_s19 }
 0xcdb   :  { %v1080_v16 = vpop.permute.xlu1 %1079 }
 0xcdc   :  { %v1082_v17 = vmul.f32 %v1080_v16, %v1077_v7 }
 0xcde   :  { %v1083_v19 = vmul.f32 %v3356_v55, %v1082_v17 }
 0xce0   :  { %v5046_v46 = vadd.f32 %v1083_v19, %v1076_v18 }
 0xce2   :  { %v1104_v21 = vmul.f32 %v3364_v43, %v5046_v46 }
 0xce4   :  { %v1109_v24 = vsel %vm367_vm2, %v1104_v21, %v1107_v22 }
 0xce5   :  { %3852 = vmatmul.mubr.msk.f32.vlgmr.msra.gmra.mrb[16].mxu0 %vm369_vm4, %v1109_v24 }
 0xce6   :  { %4303 = vmatpush3.bf16.msra.mxu0 %v4922_v61  ;;  %3892 = vmatprep.mubr.msk.f32.mxu0 %vm4591_vm3, %v4592_v29 }
 0xce7   :  { %4304 = vmatprep.subr.bf16.mxu0 %v4590_v9 }
 0xcea   :  { %4306 = vmatpush3.bf16.msra.mxu0 %v4928_v0 }
 0xceb   :  { %4307 = vmatprep.subr.bf16.mxu0 %v4590_v9 }
 0xdb8   :  { %v1179_v26 = vpop.f32.mrb[16].mxu0 }
 0xdb9   :  { %v1183_v28 = vadd.f32 %v1179_v26, %v181_v44  ;;  %v3853_v31 = vpop.f32.mrb[17].mxu0 }
 0xdba   :  { %v3368_v31 = vld [vmem:[%s5534_s2 + $0x80] sm:$0xff] }
 0xdbb   :  { %v3371_v32 = vmul.f32 -1.442695, %v1183_v28 }
 0xdbd   :  { %4517 = vpow2.f32 %v3371_v32 }
 0xdc7   :  { %v4518_v34 = vpop.eup %4517 }
 0xdc8   :  { %v1187_v37 = vadd.f32 1.0, %v4518_v34  ;;  %v3367_v34 = vld [vmem:[%s5534_s2 + $0x78] sm:$0xff] }
 0xdca   :  { %4519 = vrcp.f32 %v1187_v37 }
 0xdd4   :  { %v4520_v49 = vpop.eup %4519 }
 0xdd5   :  { %v1190_v38 = vmul.f32 %v4520_v49, %v1107_v22  ;;  %v1278_v45 = vmul.f32 %v4520_v49, %v5005_v33  ;;  %v1272_v60 = vsub.f32 1.0, %v4520_v49 }
 0xdd7   :  { %1192 = vrot.lane.b32.xlu1 %v1190_v38, %s4593_s18  ;;  %v1279_v1 = vmul.f32 %v3365_v58, %v1278_v45  ;;  %v3369_v38 = vld [vmem:[%s5534_s2 + $0x88] sm:$0xff] }
 0xe49   :  { %v1193_v39 = vpop.permute.xlu1 %1192 }
 0xe4a   :  { %3863 = vmatmul.mubr.msk.f32.vlgmr.msra.gmra.mrb[16].mxu1 %vm367_vm2, %v1193_v39 }
 0xe4b   :  { %4291 = vmatpush3.bf16.msra.mxu1 %v4864_v23  ;;  %3881 = vmatprep.mubr.msk.f32.mxu1 %vm4591_vm3, %v4592_v29 }
 0xe4c   :  { %4292 = vmatprep.subr.bf16.mxu1 %v4590_v9 }
 0xe4f   :  { %4294 = vmatpush3.bf16.msra.mxu1 %v4870_v25 }
 0xe50   :  { %4295 = vmatprep.subr.bf16.mxu1 %v4590_v9 }
 0xe53   :  { %4297 = vmatpush3.bf16.msra.mxu1 %v4881_v30 }
 0xe54   :  { %4298 = vmatprep.subr.bf16.mxu1 %v4590_v9 }
 0xe57   :  { %4300 = vmatpush3.bf16.msra.mxu1 %v4891_v35 }
 0xe58   :  { %4319 = vmatprep.subr.bf16.mxu1 %v4590_v9 }
 0xf1d   :  { %v1262_v10 = vpop.f32.mrb[16].mxu1 }
 0xf1e   :  { %1267 = vrot.lane.b32.xlu0 %v1262_v10, %s4594_s19  ;;  %v3864_v41 = vpop.f32.mrb[17].mxu1 }
 0xf22   :  { %1086 = vrot.lane.b32.xlu0 %v5046_v46, %s4595_s10 }
 0xf90   :  { %v1268_v42 = vpop.permute.xlu0 %1267 }
 0xf91   :  { %v1270_v47 = vadd.f32 %v1268_v42, %v1183_v28 }
 0xf93   :  { %4521 = vtanh.f32 %v1270_v47  ;;  %v3377_v47 = vld [vmem:[%s5534_s2 + $0x90] sm:$0xff] }
 0xf94   :  { %v1087_v51 = vpop.permute.xlu0 %1086 }
 0xf95   :  { %v1089_v53 = vsel %vm367_vm2, %v5005_v33, %v1087_v51 }
 0xf96   :  { %3363 = vst.msk [vmem:[%s5540_s11 + $0x8] sm:$0xff] %vm369_vm4, %v1089_v53 }
 0xf9d   :  { %v4522_v57 = vpop.eup %4521 }
 0xf9e   :  { %1274 = vrot.lane.b32.xlu1 %v4522_v57, %s4594_s19 }
0x1010   :  { %v1275_v63 = vpop.permute.xlu1 %1274 }
0x1011   :  { %v1277_v2 = vmul.f32 %v1275_v63, %v1272_v60 }
0x1013   :  { %v5088_v4 = vadd.f32 %v1279_v1, %v1277_v2 }
0x1015   :  { %v1281_v5 = vmul.f32 %v3366_v3, %v5088_v4 }
0x1017   :  { %v1282_v7 = vsel %vm367_vm2, %v1281_v5, %v1087_v51 }
0x1018   :  { %3882 = vmatmul.mubr.msk.f32.vlgmr.msra.gmra.mrb[18].mxu1 %vm369_vm4, %v1282_v7 }
0x1019   :  { %4321 = vmatpush3.bf16.msra.mxu1 %v4772_v36  ;;  %3922 = vmatprep.mubr.msk.f32.mxu1 %vm4591_vm3, %v4592_v29 }
0x101a   :  { %4322 = vmatprep.subr.bf16.mxu1 %v4590_v9 }
0x101d   :  { %4324 = vmatpush3.bf16.msra.mxu1 %v4786_v40 }
0x101e   :  { %4325 = vmatprep.subr.bf16.mxu1 %v4590_v9 }
0x10eb   :  { %v1352_v33 = vpop.f32.mrb[18].mxu1 }
0x10ec   :  { %v1356_v55 = vadd.f32 %v1352_v33, %v4816_v50  ;;  %v3883_v16 = vpop.f32.mrb[19].mxu1 }
0x10ee   :  { %v3374_v17 = vmul.f32 -1.442695, %v1356_v55 }
0x10f0   :  { %4523 = vpow2.f32 %v3374_v17 }
0x10fa   :  { %v4524_v18 = vpop.eup %4523 }
0x10fb   :  { %v1360_v19 = vadd.f32 1.0, %v4524_v18 }
0x10fd   :  { %4525 = vrcp.f32 %v1360_v19 }
0x1107   :  { %v4526_v43 = vpop.eup %4525 }
0x1108   :  { %v1363_v21 = vmul.f32 %v4526_v43, %v1087_v51  ;;  %v1445_v32 = vmul.f32 %v4526_v43, %v3368_v31  ;;  %v1448_v49 = vsub.f32 1.0, %v4526_v43 }
0x110a   :  { %1365 = vrot.lane.b32.xlu1 %v1363_v21, %s4593_s18  ;;  %v1446_v37 = vadd.f32 %v3367_v34, %v1445_v32 }
0x110c   :  { %v1447_v41 = vmul.f32 %v1446_v37, %v5046_v46  ;;  %v186_v46 = vadd.f32 %v4839_v8, %v4829_v56 }
0x117c   :  { %v1366_v22 = vpop.permute.xlu1 %1365 }
0x117d   :  { %3893 = vmatmul.mubr.msk.f32.vlgmr.msra.gmra.mrb[18].mxu0 %vm367_vm2, %v1366_v22  ;;  %v3378_v22 = vld [vmem:[%s5534_s2 + $0x98] sm:$0xff] }
0x117e   :  { %4309 = vmatpush3.bf16.msra.mxu0 %v4675_v6  ;;  %3911 = vmatprep.mubr.msk.f32.mxu0 %vm4591_vm3, %v4592_v29 }
0x117f   :  { %4310 = vmatprep.subr.bf16.mxu0 %v4590_v9 }
0x1182   :  { %4312 = vmatpush3.bf16.msra.mxu0 %v4693_v12 }
0x1183   :  { %4313 = vmatprep.subr.bf16.mxu0 %v4590_v9 }
0x1186   :  { %4315 = vmatpush3.bf16.msra.mxu0 %v4718_v20 }
0x1187   :  { %4316 = vmatprep.subr.bf16.mxu0 %v4590_v9 }
0x118a   :  { %4318 = vmatpush3.bf16.msra.mxu0 %v4743_v27 }
0x118b   :  { %4337 = vmatprep.subr.bf16.mxu0 %v4590_v9 }
0x1250   :  { %v1435_v50 = vpop.f32.mrb[18].mxu0 }
0x1251   :  { %1440 = vrot.lane.b32.xlu0 %v1435_v50, %s4594_s19  ;;  %v3894_v24 = vpop.f32.mrb[19].mxu0 }
0x1255   :  { %1477 = vrot.lane.b32.xlu0 %v5088_v4, %s4595_s10 }
0x12c3   :  { %v1441_v44 = vpop.permute.xlu0 %1440 }
0x12c4   :  { %v1443_v26 = vadd.f32 %v1441_v44, %v1356_v55 }
0x12c6   :  { %4527 = vtanh.f32 %v1443_v26 }
0x12c7   :  { %v1478_v57 = vpop.permute.xlu0 %1477 }
0x12d0   :  { %v4528_v28 = vpop.eup %4527 }
0x12d1   :  { %1450 = vrot.lane.b32.xlu1 %v4528_v28, %s4594_s19  ;;  %v3379_v28 = vld [vmem:[%s5534_s2 + $0xa0] sm:$0xff] }
0x1343   :  { %v1451_v39 = vpop.permute.xlu1 %1450 }
0x1344   :  { %v1453_v10 = vmul.f32 %v1451_v39, %v1448_v49 }
0x1346   :  { %v1454_v42 = vmul.f32 %v3369_v38, %v1453_v10 }
0x1348   :  { %v5129_v51 = vadd.f32 %v1454_v42, %v1447_v41 }
0x134a   :  { %v1475_v53 = vmul.f32 %v3377_v47, %v5129_v51 }
0x134c   :  { %v1480_v45 = vsel %vm367_vm2, %v1475_v53, %v1478_v57 }
0x134d   :  { %3912 = vmatmul.mubr.msk.f32.vlgmr.msra.gmra.mrb[20].mxu0 %vm369_vm4, %v1480_v45 }
0x134e   :  { %4339 = vmatpush3.bf16.msra.mxu0 %v4922_v61  ;;  %3952 = vmatprep.mubr.msk.f32.mxu0 %vm4591_vm3, %v4592_v29 }
0x134f   :  { %4340 = vmatprep.subr.bf16.mxu0 %v4590_v9 }
0x1352   :  { %4342 = vmatpush3.bf16.msra.mxu0 %v4928_v0 }
0x1353   :  { %4343 = vmatprep.subr.bf16.mxu0 %v4590_v9 }
0x1420   :  { %v1550_v58 = vpop.f32.mrb[20].mxu0 }
0x1421   :  { %v1554_v60 = vadd.f32 %v1550_v58, %v186_v46  ;;  %v3913_v63 = vpop.f32.mrb[21].mxu0  ;;  %v3381_v58 = vld [vmem:[%s5534_s2 + $0xb0] sm:$0xff] }
0x1422   :  { %v3380_v63 = vld [vmem:[%s5534_s2 + $0xa8] sm:$0xff] }
0x1423   :  { %v3384_v1 = vmul.f32 -1.442695, %v1554_v60 }
0x1425   :  { %4529 = vpow2.f32 %v3384_v1 }
0x142f   :  { %v4530_v2 = vpop.eup %4529 }
0x1430   :  { %v1558_v3 = vadd.f32 1.0, %v4530_v2 }
0x1432   :  { %4531 = vrcp.f32 %v1558_v3  ;;  %v3382_v3 = vld [vmem:[%s5534_s2 + $0xb8] sm:$0xff] }
0x143c   :  { %v4532_v5 = vpop.eup %4531 }
0x143d   :  { %v1561_v7 = vmul.f32 %v4532_v5, %v1478_v57  ;;  %v1649_v21 = vmul.f32 %v4532_v5, %v5088_v4  ;;  %v1643_v50 = vsub.f32 1.0, %v4532_v5 }
0x143f   :  { %1563 = vrot.lane.b32.xlu1 %v1561_v7, %s4593_s18  ;;  %v1650_v44 = vmul.f32 %v3378_v22, %v1649_v21 }
0x14b1   :  { %v1564_v33 = vpop.permute.xlu1 %1563 }
0x14b2   :  { %3923 = vmatmul.mubr.msk.f32.vlgmr.msra.gmra.mrb[20].mxu1 %vm367_vm2, %v1564_v33 }
0x14b3   :  { %4327 = vmatpush3.bf16.msra.mxu1 %v4864_v23  ;;  %3941 = vmatprep.mubr.msk.f32.mxu1 %vm4591_vm3, %v4592_v29 }
0x14b4   :  { %4328 = vmatprep.subr.bf16.mxu1 %v4590_v9 }
0x14b7   :  { %4330 = vmatpush3.bf16.msra.mxu1 %v4870_v25 }
0x14b8   :  { %4331 = vmatprep.subr.bf16.mxu1 %v4590_v9 }
0x14bb   :  { %4333 = vmatpush3.bf16.msra.mxu1 %v4881_v30 }
0x14bc   :  { %4334 = vmatprep.subr.bf16.mxu1 %v4590_v9 }
0x14bf   :  { %4336 = vmatpush3.bf16.msra.mxu1 %v4891_v35 }
0x14c0   :  { %4355 = vmatprep.subr.bf16.mxu1 %v4590_v9 }
0x1585   :  { %v1633_v8 = vpop.f32.mrb[20].mxu1 }
0x1586   :  { %1638 = vrot.lane.b32.xlu0 %v1633_v8, %s4594_s19  ;;  %v3924_v55 = vpop.f32.mrb[21].mxu1 }
0x1587   :  { %v3390_v55 = vld [vmem:[%s5534_s2 + $0xc0] sm:$0xff] }
0x158a   :  { %1457 = vrot.lane.b32.xlu0 %v5129_v51, %s4595_s10 }
0x15f8   :  { %v1639_v16 = vpop.permute.xlu0 %1638 }
0x15f9   :  { %v1641_v17 = vadd.f32 %v1639_v16, %v1554_v60 }
0x15fb   :  { %4533 = vtanh.f32 %v1641_v17 }
0x15fc   :  { %v1458_v18 = vpop.permute.xlu0 %1457 }
0x15fd   :  { %v1460_v19 = vsel %vm367_vm2, %v5088_v4, %v1458_v18 }
0x15fe   :  { %3376 = vst.msk [vmem:[%s5540_s11 + $0x10] sm:$0xff] %vm369_vm4, %v1460_v19 }
0x1605   :  { %v4534_v43 = vpop.eup %4533 }
0x1606   :  { %1645 = vrot.lane.b32.xlu1 %v4534_v43, %s4594_s19 }
0x1678   :  { %v1646_v24 = vpop.permute.xlu1 %1645 }
0x1679   :  { %v1648_v26 = vmul.f32 %v1646_v24, %v1643_v50 }
0x167b   :  { %v5171_v31 = vadd.f32 %v1650_v44, %v1648_v26 }
0x167d   :  { %v1652_v32 = vmul.f32 %v3379_v28, %v5171_v31 }
0x167f   :  { %v1653_v34 = vsel %vm367_vm2, %v1652_v32, %v1458_v18 }
0x1680   :  { %3942 = vmatmul.mubr.msk.f32.vlgmr.msra.gmra.mrb[22].mxu1 %vm369_vm4, %v1653_v34 }
0x1681   :  { %4357 = vmatpush3.bf16.msra.mxu1 %v4772_v36  ;;  %3982 = vmatprep.mubr.msk.f32.mxu1 %vm4591_vm3, %v4592_v29 }
0x1682   :  { %4358 = vmatprep.subr.bf16.mxu1 %v4590_v9 }
0x1685   :  { %4360 = vmatpush3.bf16.msra.mxu1 %v4786_v40 }
0x1686   :  { %4361 = vmatprep.subr.bf16.mxu1 %v4590_v9 }
0x1753   :  { %v1723_v4 = vpop.f32.mrb[22].mxu1 }
0x1754   :  { %v1727_v37 = vadd.f32 %v1723_v4, %v4813_v48  ;;  %v3943_v49 = vpop.f32.mrb[23].mxu1 }
0x1756   :  { %v3387_v38 = vmul.f32 -1.442695, %v1727_v37 }
0x1758   :  { %4535 = vpow2.f32 %v3387_v38 }
0x1762   :  { %v4536_v39 = vpop.eup %4535 }
0x1763   :  { %v1731_v10 = vadd.f32 1.0, %v4536_v39 }
0x1765   :  { %4537 = vrcp.f32 %v1731_v10  ;;  %v3391_v10 = vld [vmem:[%s5534_s2 + $0xc8] sm:$0xff] }
0x176f   :  { %v4538_v41 = vpop.eup %4537 }
0x1770   :  { %v1734_v42 = vmul.f32 %v4538_v41, %v1458_v18  ;;  %v1816_v60 = vmul.f32 %v4538_v41, %v3381_v58  ;;  %v1819_v2 = vsub.f32 1.0, %v4538_v41 }
0x1772   :  { %1736 = vrot.lane.b32.xlu1 %v1734_v42, %s4593_s18  ;;  %v1817_v1 = vadd.f32 %v3380_v63, %v1816_v60 }
0x1774   :  { %v1818_v33 = vmul.f32 %v1817_v1, %v5129_v51  ;;  %v191_v51 = vadd.f32 %v4829_v56, %v4845_v13 }
0x17e4   :  { %v1737_v47 = vpop.permute.xlu1 %1736 }
0x17e5   :  { %3953 = vmatmul.mubr.msk.f32.vlgmr.msra.gmra.mrb[22].mxu0 %vm367_vm2, %v1737_v47 }
0x17e6   :  { %4345 = vmatpush3.bf16.msra.mxu0 %v4675_v6  ;;  %3971 = vmatprep.mubr.msk.f32.mxu0 %vm4591_vm3, %v4592_v29 }
0x17e7   :  { %4346 = vmatprep.subr.bf16.mxu0 %v4590_v9 }
0x17ea   :  { %4348 = vmatpush3.bf16.msra.mxu0 %v4693_v12 }
0x17eb   :  { %4349 = vmatprep.subr.bf16.mxu0 %v4590_v9 }
0x17ee   :  { %4351 = vmatpush3.bf16.msra.mxu0 %v4718_v20 }
0x17ef   :  { %4352 = vmatprep.subr.bf16.mxu0 %v4590_v9 }
0x17f2   :  { %4354 = vmatpush3.bf16.msra.mxu0 %v4743_v27 }
0x17f3   :  { %4373 = vmatprep.subr.bf16.mxu0 %v4590_v9 }
0x18b8   :  { %v1806_v48 = vpop.f32.mrb[22].mxu0 }
0x18b9   :  { %1811 = vrot.lane.b32.xlu0 %v1806_v48, %s4594_s19  ;;  %v3954_v53 = vpop.f32.mrb[23].mxu0 }
0x18ba   :  { %v3392_v53 = vld [vmem:[%s5534_s2 + $0xd0] sm:$0xff] }
0x18bd   :  { %1848 = vrot.lane.b32.xlu0 %v5171_v31, %s4595_s10 }
0x192b   :  { %v1812_v57 = vpop.permute.xlu0 %1811 }
0x192c   :  { %v1814_v45 = vadd.f32 %v1812_v57, %v1727_v37 }
0x192e   :  { %4539 = vtanh.f32 %v1814_v45 }
0x192f   :  { %v1849_v18 = vpop.permute.xlu0 %1848 }
0x1938   :  { %v4540_v46 = vpop.eup %4539 }
0x1939   :  { %1821 = vrot.lane.b32.xlu1 %v4540_v46, %s4594_s19 }
0x19ab   :  { %v1822_v5 = vpop.permute.xlu1 %1821 }
0x19ac   :  { %v1824_v7 = vmul.f32 %v1822_v5, %v1819_v2 }
0x19ae   :  { %v1825_v8 = vmul.f32 %v3382_v3, %v1824_v7 }
0x19b0   :  { %v5212_v16 = vadd.f32 %v1825_v8, %v1818_v33 }
0x19b2   :  { %v1846_v17 = vmul.f32 %v3390_v55, %v5212_v16 }
0x19b4   :  { %v1851_v19 = vsel %vm367_vm2, %v1846_v17, %v1849_v18 }
0x19b5   :  { %3972 = vmatmul.mubr.msk.f32.vlgmr.msra.gmra.mrb[24].mxu0 %vm369_vm4, %v1851_v19 }
0x19b6   :  { %4375 = vmatpush3.bf16.msra.mxu0 %v4922_v61  ;;  %4012 = vmatprep.mubr.msk.f32.mxu0 %vm4591_vm3, %v4592_v29 }
0x19b7   :  { %4376 = vmatprep.subr.bf16.mxu0 %v4590_v9 }
0x19ba   :  { %4378 = vmatpush3.bf16.msra.mxu0 %v4928_v0 }
0x19bb   :  { %4379 = vmatprep.subr.bf16.mxu0 %v4590_v9 }
0x1a88   :  { %v1921_v43 = vpop.f32.mrb[24].mxu0 }
0x1a89   :  { %v1925_v21 = vadd.f32 %v1921_v43, %v191_v51  ;;  %v3973_v22 = vpop.f32.mrb[25].mxu0  ;;  %v3393_v51 = vld [vmem:[%s5534_s2 + $0xd8] sm:$0xff] }
0x1a8a   :  { %v3395_v22 = vld [vmem:[%s5534_s2 + $0xe8] sm:$0xff] }
0x1a8b   :  { %v3397_v50 = vmul.f32 -1.442695, %v1925_v21 }
0x1a8d   :  { %4541 = vpow2.f32 %v3397_v50 }
0x1a97   :  { %v4542_v24 = vpop.eup %4541 }
0x1a98   :  { %v1929_v44 = vadd.f32 1.0, %v4542_v24 }
0x1a9a   :  { %4543 = vrcp.f32 %v1929_v44 }
0x1aa4   :  { %v4544_v26 = vpop.eup %4543 }
0x1aa5   :  { %v1932_v28 = vmul.f32 %v4544_v26, %v1849_v18  ;;  %v2020_v39 = vmul.f32 %v4544_v26, %v5171_v31  ;;  %v2014_v41 = vsub.f32 1.0, %v4544_v26  ;;  %v3394_v18 = vld [vmem:[%s5534_s2 + $0xe0] sm:$0xff] }
0x1aa7   :  { %1934 = vrot.lane.b32.xlu1 %v1932_v28, %s4593_s18  ;;  %v2021_v47 = vmul.f32 %v3391_v10, %v2020_v39  ;;  %v3403_v28 = vld [vmem:[%s5534_s2 + $0xf0] sm:$0xff] }
0x1b19   :  { %v1935_v32 = vpop.permute.xlu1 %1934 }
0x1b1a   :  { %3983 = vmatmul.mubr.msk.f32.vlgmr.msra.gmra.mrb[24].mxu1 %vm367_vm2, %v1935_v32 }
0x1b1b   :  { %4363 = vmatpush3.bf16.msra.mxu1 %v4864_v23  ;;  %4001 = vmatprep.mubr.msk.f32.mxu1 %vm4591_vm3, %v4592_v29 }
0x1b1c   :  { %4364 = vmatprep.subr.bf16.mxu1 %v4590_v9 }
0x1b1f   :  { %4366 = vmatpush3.bf16.msra.mxu1 %v4870_v25 }
0x1b20   :  { %4367 = vmatprep.subr.bf16.mxu1 %v4590_v9 }
0x1b23   :  { %4369 = vmatpush3.bf16.msra.mxu1 %v4881_v30 }
0x1b24   :  { %4370 = vmatprep.subr.bf16.mxu1 %v4590_v9 }
0x1b27   :  { %4372 = vmatpush3.bf16.msra.mxu1 %v4891_v35 }
0x1b28   :  { %4391 = vmatprep.subr.bf16.mxu1 %v4590_v9 }
0x1bed   :  { %v2004_v56 = vpop.f32.mrb[24].mxu1 }
0x1bee   :  { %2009 = vrot.lane.b32.xlu0 %v2004_v56, %s4594_s19  ;;  %v3984_v13 = vpop.f32.mrb[25].mxu1 }
0x1bf2   :  { %1828 = vrot.lane.b32.xlu0 %v5212_v16, %s4595_s10 }
0x1c60   :  { %v2010_v34 = vpop.permute.xlu0 %2009 }
0x1c61   :  { %v2012_v4 = vadd.f32 %v2010_v34, %v1925_v21 }
0x1c63   :  { %4545 = vtanh.f32 %v2012_v4 }
0x1c64   :  { %v1829_v37 = vpop.permute.xlu0 %1828 }
0x1c65   :  { %v1831_v49 = vsel %vm367_vm2, %v5171_v31, %v1829_v37 }
0x1c66   :  { %3389 = vst.msk [vmem:[%s5540_s11 + $0x18] sm:$0xff] %vm369_vm4, %v1831_v49 }
0x1c6d   :  { %v4546_v38 = vpop.eup %4545 }
0x1c6e   :  { %2016 = vrot.lane.b32.xlu1 %v4546_v38, %s4594_s19 }
0x1ce0   :  { %v2017_v42 = vpop.permute.xlu1 %2016 }
0x1ce1   :  { %v2019_v48 = vmul.f32 %v2017_v42, %v2014_v41 }
0x1ce3   :  { %v5254_v57 = vadd.f32 %v2021_v47, %v2019_v48 }
0x1ce5   :  { %v2023_v45 = vmul.f32 %v3392_v53, %v5254_v57 }
0x1ce7   :  { %v2024_v46 = vsel %vm367_vm2, %v2023_v45, %v1829_v37 }
0x1ce8   :  { %4002 = vmatmul.mubr.msk.f32.vlgmr.msra.gmra.mrb[26].mxu1 %vm369_vm4, %v2024_v46 }
0x1ce9   :  { %4393 = vmatpush3.bf16.msra.mxu1 %v4772_v36  ;;  %4042 = vmatprep.mubr.msk.f32.mxu1 %vm4591_vm3, %v4592_v29 }
0x1cea   :  { %4394 = vmatprep.subr.bf16.mxu1 %v4590_v9 }
0x1ced   :  { %4396 = vmatpush3.bf16.msra.mxu1 %v4786_v40 }
0x1cee   :  { %4397 = vmatprep.subr.bf16.mxu1 %v4590_v9 }
0x1dbb   :  { %v2094_v31 = vpop.f32.mrb[26].mxu1 }
0x1dbc   :  { %v2098_v58 = vadd.f32 %v2094_v31, %v4822_v54  ;;  %v4003_v60 = vpop.f32.mrb[27].mxu1 }
0x1dbe   :  { %v3400_v63 = vmul.f32 -1.442695, %v2098_v58 }
0x1dc0   :  { %4547 = vpow2.f32 %v3400_v63 }
0x1dca   :  { %v4548_v1 = vpop.eup %4547 }
0x1dcb   :  { %v2102_v2 = vadd.f32 1.0, %v4548_v1  ;;  %v3404_v1 = vld [vmem:[%s5534_s2 + $0xf8] sm:$0xff] }
0x1dcd   :  { %4549 = vrcp.f32 %v2102_v2 }
0x1dd7   :  { %v4550_v3 = vpop.eup %4549 }
0x1dd8   :  { %v2105_v5 = vmul.f32 %v4550_v3, %v1829_v37  ;;  %v2187_v19 = vmul.f32 %v4550_v3, %v3394_v18  ;;  %v2190_v21 = vsub.f32 1.0, %v4550_v3 }
0x1dda   :  { %2107 = vrot.lane.b32.xlu1 %v2105_v5, %s4593_s18  ;;  %v2188_v43 = vadd.f32 %v3393_v51, %v2187_v19 }
0x1ddc   :  { %v2189_v44 = vmul.f32 %v2188_v43, %v5212_v16  ;;  %v5309_v16 = vld [vmem:[%s5537_s4] ss:$0 sm:$0xff] }
0x1ddd   :  { %v196_v4 = vadd.f32 %v5309_v16, %v4843_v11 }
0x1e4c   :  { %v2108_v7 = vpop.permute.xlu1 %2107 }
0x1e4d   :  { %4013 = vmatmul.mubr.msk.f32.vlgmr.msra.gmra.mrb[26].mxu0 %vm367_vm2, %v2108_v7 }
0x1e4e   :  { %4381 = vmatpush3.bf16.msra.mxu0 %v4675_v6  ;;  %4031 = vmatprep.mubr.msk.f32.mxu0 %vm4591_vm3, %v4592_v29 }
0x1e4f   :  { %4382 = vmatprep.subr.bf16.mxu0 %v4590_v9 }
0x1e52   :  { %4384 = vmatpush3.bf16.msra.mxu0 %v4693_v12 }
0x1e53   :  { %4385 = vmatprep.subr.bf16.mxu0 %v4590_v9 }
0x1e56   :  { %4387 = vmatpush3.bf16.msra.mxu0 %v4718_v20 }
0x1e57   :  { %4388 = vmatprep.subr.bf16.mxu0 %v4590_v9 }
0x1e5a   :  { %4390 = vmatpush3.bf16.msra.mxu0 %v4743_v27 }
0x1e5b   :  { %4409 = vmatprep.subr.bf16.mxu0 %v4590_v9 }
0x1f20   :  { %v2177_v54 = vpop.f32.mrb[26].mxu0 }
0x1f21   :  { %2182 = vrot.lane.b32.xlu0 %v2177_v54, %s4594_s19  ;;  %v4014_v33 = vpop.f32.mrb[27].mxu0  ;;  %v3405_v54 = vld [vmem:[%s5534_s2 + $0x100] sm:$0xff] }
0x1f25   :  { %2219 = vrot.lane.b32.xlu0 %v5254_v57, %s4595_s10 }
0x1f93   :  { %v2183_v8 = vpop.permute.xlu0 %2182 }
0x1f94   :  { %v2185_v55 = vadd.f32 %v2183_v8, %v2098_v58 }
0x1f96   :  { %4551 = vtanh.f32 %v2185_v55 }
0x1f97   :  { %v2220_v13 = vpop.permute.xlu0 %2219 }
0x1fa0   :  { %v4552_v17 = vpop.eup %4551 }
0x1fa1   :  { %2192 = vrot.lane.b32.xlu1 %v4552_v17, %s4594_s19 }
0x2013   :  { %v2193_v50 = vpop.permute.xlu1 %2192 }
0x2014   :  { %v2195_v24 = vmul.f32 %v2193_v50, %v2190_v21 }
0x2016   :  { %v2196_v26 = vmul.f32 %v3395_v22, %v2195_v24 }
0x2018   :  { %v5295_v32 = vadd.f32 %v2196_v26, %v2189_v44 }
0x201a   :  { %v2217_v56 = vmul.f32 %v3403_v28, %v5295_v32 }
0x201c   :  { %v2222_v34 = vsel %vm367_vm2, %v2217_v56, %v2220_v13  ;;  %v3407_v56 = vld [vmem:[%s5534_s2 + $0x110] sm:$0xff] }
0x201d   :  { %4032 = vmatmul.mubr.msk.f32.vlgmr.msra.gmra.mrb[28].mxu0 %vm369_vm4, %v2222_v34  ;;  %v3406_v34 = vld [vmem:[%s5534_s2 + $0x108] sm:$0xff] }
0x201e   :  { %4411 = vmatpush3.bf16.msra.mxu0 %v4922_v61  ;;  %4072 = vmatprep.mubr.msk.f32.mxu0 %vm4591_vm3, %v4592_v29 }
0x201f   :  { %4412 = vmatprep.subr.bf16.mxu0 %v4590_v9 }
0x2022   :  { %4414 = vmatpush3.bf16.msra.mxu0 %v4928_v0 }
0x2023   :  { %4415 = vmatprep.subr.bf16.mxu0 %v4590_v9 }
0x20f0   :  { %v2292_v37 = vpop.f32.mrb[28].mxu0 }
0x20f1   :  { %v2296_v49 = vadd.f32 %v2292_v37, %v196_v4  ;;  %v4033_v38 = vpop.f32.mrb[29].mxu0 }
0x20f3   :  { %v3410_v39 = vmul.f32 -1.442695, %v2296_v49 }
0x20f5   :  { %4553 = vpow2.f32 %v3410_v39 }
0x20ff   :  { %v4554_v10 = vpop.eup %4553 }
0x2100   :  { %v2300_v41 = vadd.f32 1.0, %v4554_v10 }
0x2102   :  { %4555 = vrcp.f32 %v2300_v41 }
0x210c   :  { %v4556_v42 = vpop.eup %4555 }
0x210d   :  { %v2303_v47 = vmul.f32 %v4556_v42, %v2220_v13  ;;  %v2391_v63 = vmul.f32 %v4556_v42, %v5254_v57  ;;  %v2385_v2 = vsub.f32 1.0, %v4556_v42  ;;  %v3416_v42 = vld [vmem:[%s5534_s2 + $0x120] sm:$0xff] }
0x210f   :  { %2305 = vrot.lane.b32.xlu1 %v2303_v47, %s4593_s18  ;;  %v2392_v5 = vmul.f32 %v3404_v1, %v2391_v63 }
0x2181   :  { %v2306_v48 = vpop.permute.xlu1 %2305 }
0x2182   :  { %4043 = vmatmul.mubr.msk.f32.vlgmr.msra.gmra.mrb[28].mxu1 %vm367_vm2, %v2306_v48 }
0x2183   :  { %4399 = vmatpush3.bf16.msra.mxu1 %v4864_v23  ;;  %4061 = vmatprep.mubr.msk.f32.mxu1 %vm4591_vm3, %v4592_v29 }
0x2184   :  { %4400 = vmatprep.subr.bf16.mxu1 %v4590_v9 }
0x2187   :  { %4402 = vmatpush3.bf16.msra.mxu1 %v4870_v25 }
0x2188   :  { %4403 = vmatprep.subr.bf16.mxu1 %v4590_v9 }
0x218b   :  { %4405 = vmatpush3.bf16.msra.mxu1 %v4881_v30 }
0x218c   :  { %4406 = vmatprep.subr.bf16.mxu1 %v4590_v9 }
0x218f   :  { %4408 = vmatpush3.bf16.msra.mxu1 %v4891_v35 }
0x2190   :  { %4427 = vmatprep.subr.bf16.mxu1 %v4590_v9 }
0x2255   :  { %v2375_v11 = vpop.f32.mrb[28].mxu1 }
0x2256   :  { %2380 = vrot.lane.b32.xlu0 %v2375_v11, %s4594_s19  ;;  %v4044_v53 = vpop.f32.mrb[29].mxu1 }
0x225a   :  { %2199 = vrot.lane.b32.xlu0 %v5295_v32, %s4595_s10 }
0x22c8   :  { %v2381_v45 = vpop.permute.xlu0 %2380 }
0x22c9   :  { %v2383_v46 = vadd.f32 %v2381_v45, %v2296_v49  ;;  %v3408_v49 = vld [vmem:[%s5534_s2 + $0x118] sm:$0xff] }
0x22cb   :  { %4557 = vtanh.f32 %v2383_v46 }
0x22cc   :  { %v2200_v31 = vpop.permute.xlu0 %2199 }
0x22cd   :  { %v2202_v58 = vsel %vm367_vm2, %v5254_v57, %v2200_v31 }
0x22ce   :  { %3402 = vst.msk [vmem:[%s5540_s11 + $0x20] sm:$0xff] %vm369_vm4, %v2202_v58 }
0x22d5   :  { %v4558_v60 = vpop.eup %4557 }
0x22d6   :  { %2387 = vrot.lane.b32.xlu1 %v4558_v60, %s4594_s19 }
0x2348   :  { %v2388_v3 = vpop.permute.xlu1 %2387 }
0x2349   :  { %v2390_v7 = vmul.f32 %v2388_v3, %v2385_v2 }
0x234b   :  { %v5342_v33 = vadd.f32 %v2392_v5, %v2390_v7 }
0x234d   :  { %v2394_v8 = vmul.f32 %v3405_v54, %v5342_v33 }
0x234f   :  { %v2395_v55 = vsel %vm367_vm2, %v2394_v8, %v2200_v31 }
0x2350   :  { %4062 = vmatmul.mubr.msk.f32.vlgmr.msra.gmra.mrb[30].mxu1 %vm369_vm4, %v2395_v55 }
0x2351   :  { %4429 = vmatpush3.bf16.msra.mxu1 %v4772_v36  ;;  %4102 = vmatprep.mubr.msk.f32.mxu1 %vm4591_vm3, %v4592_v29 }
0x2352   :  { %4430 = vmatprep.subr.bf16.mxu1 %v4590_v9 }
0x2355   :  { %4432 = vmatpush3.bf16.msra.mxu1 %v4786_v40 }
0x2356   :  { %4433 = vmatprep.subr.bf16.mxu1 %v4590_v9 }
0x2423   :  { %v2465_v57 = vpop.f32.mrb[30].mxu1 }
0x2424   :  { %v2469_v17 = vadd.f32 %v2465_v57, %v4819_v52  ;;  %v4063_v18 = vpop.f32.mrb[31].mxu1 }
0x2425   :  { %v3417_v18 = vld [vmem:[%s5534_s2 + $0x128] sm:$0xff] }
0x2426   :  { %v3413_v19 = vmul.f32 -1.442695, %v2469_v17 }
0x2428   :  { %4559 = vpow2.f32 %v3413_v19 }
0x2432   :  { %v4560_v51 = vpop.eup %4559 }
0x2433   :  { %v2473_v43 = vadd.f32 1.0, %v4560_v51 }
0x2435   :  { %4561 = vrcp.f32 %v2473_v43 }
0x243f   :  { %v4562_v21 = vpop.eup %4561 }
0x2440   :  { %v2476_v22 = vmul.f32 %v4562_v21, %v2200_v31  ;;  %v2558_v13 = vmul.f32 %v4562_v21, %v3407_v56  ;;  %v2561_v37 = vsub.f32 1.0, %v4562_v21 }
0x2442   :  { %2478 = vrot.lane.b32.xlu1 %v2476_v22, %s4593_s18  ;;  %v2559_v4 = vadd.f32 %v3406_v34, %v2558_v13  ;;  %v3418_v22 = vld [vmem:[%s5534_s2 + $0x130] sm:$0xff] }
0x2444   :  { %v2560_v10 = vmul.f32 %v2559_v4, %v5295_v32  ;;  %v201_v32 = vadd.f32 %v5309_v16, %v4849_v15 }
0x24b4   :  { %v2479_v50 = vpop.permute.xlu1 %2478 }
0x24b5   :  { %4073 = vmatmul.mubr.msk.f32.vlgmr.msra.gmra.mrb[30].mxu0 %vm367_vm2, %v2479_v50 }
0x24b6   :  { %4417 = vmatpush3.bf16.msra.mxu0 %v4675_v6  ;;  %4091 = vmatprep.mubr.msk.f32.mxu0 %vm4591_vm3, %v4592_v29 }
0x24b7   :  { %4418 = vmatprep.subr.bf16.mxu0 %v4590_v9 }
0x24ba   :  { %4420 = vmatpush3.bf16.msra.mxu0 %v4693_v12 }
0x24bb   :  { %4421 = vmatprep.subr.bf16.mxu0 %v4590_v9 }
0x24be   :  { %4423 = vmatpush3.bf16.msra.mxu0 %v4718_v20 }
0x24bf   :  { %4424 = vmatprep.subr.bf16.mxu0 %v4590_v9 }
0x24c2   :  { %4426 = vmatpush3.bf16.msra.mxu0 %v4743_v27 }
0x24c3   :  { %4445 = vmatprep.subr.bf16.mxu0 %v4590_v9 }
0x2588   :  { %v2548_v52 = vpop.f32.mrb[30].mxu0 }
0x2589   :  { %2553 = vrot.lane.b32.xlu0 %v2548_v52, %s4594_s19  ;;  %v4074_v24 = vpop.f32.mrb[31].mxu0 }
0x258d   :  { %2590 = vrot.lane.b32.xlu0 %v5342_v33, %s4595_s10 }
0x25fb   :  { %v2554_v44 = vpop.permute.xlu0 %2553 }
0x25fc   :  { %v2556_v26 = vadd.f32 %v2554_v44, %v2469_v17 }
0x25fe   :  { %4563 = vtanh.f32 %v2556_v26 }
0x25ff   :  { %v2591_v11 = vpop.permute.xlu0 %2590 }
0x2608   :  { %v4564_v28 = vpop.eup %4563 }
0x2609   :  { %2563 = vrot.lane.b32.xlu1 %v4564_v28, %s4594_s19 }
0x267b   :  { %v2564_v38 = vpop.permute.xlu1 %2563 }
0x267c   :  { %v2566_v39 = vmul.f32 %v2564_v38, %v2561_v37 }
0x267e   :  { %v2567_v41 = vmul.f32 %v3408_v49, %v2566_v39  ;;  %v3419_v49 = vld [vmem:[%s5534_s2 + $0x138] sm:$0xff] }
0x2680   :  { %v5383_v47 = vadd.f32 %v2567_v41, %v2560_v10  ;;  %v3421_v10 = vld [vmem:[%s5534_s2 + $0x148] sm:$0xff] }
0x2682   :  { %v2588_v48 = vmul.f32 %v3416_v42, %v5383_v47 }
0x2684   :  { %v2593_v53 = vsel %vm367_vm2, %v2588_v48, %v2591_v11 }
0x2685   :  { %4092 = vmatmul.mubr.msk.f32.vlgmr.msra.gmra.mrb[32].mxu0 %vm369_vm4, %v2593_v53  ;;  %v3429_v53 = vld [vmem:[%s5534_s2 + $0x150] sm:$0xff] }
0x2686   :  { %4447 = vmatpush3.bf16.msra.mxu0 %v4922_v61  ;;  %4132 = vmatprep.mubr.msk.f32.mxu0 %vm4591_vm3, %v4592_v29 }
0x2687   :  { %4448 = vmatprep.subr.bf16.mxu0 %v4590_v9 }
0x268a   :  { %4450 = vmatpush3.bf16.msra.mxu0 %v4928_v0 }
0x268b   :  { %4451 = vmatprep.subr.bf16.mxu0 %v4590_v9 }
0x2758   :  { %v2663_v45 = vpop.f32.mrb[32].mxu0 }
0x2759   :  { %v2667_v46 = vadd.f32 %v2663_v45, %v201_v32  ;;  %v4093_v31 = vpop.f32.mrb[33].mxu0 }
0x275b   :  { %v3423_v58 = vmul.f32 -1.442695, %v2667_v46 }
0x275d   :  { %4565 = vpow2.f32 %v3423_v58 }
0x2767   :  { %v4566_v60 = vpop.eup %4565 }
0x2768   :  { %v2671_v63 = vadd.f32 1.0, %v4566_v60 }
0x276a   :  { %4567 = vrcp.f32 %v2671_v63 }
0x2774   :  { %v4568_v1 = vpop.eup %4567 }
0x2775   :  { %v2674_v2 = vmul.f32 %v4568_v1, %v2591_v11  ;;  %v2762_v17 = vmul.f32 %v4568_v1, %v5342_v33  ;;  %v2756_v19 = vsub.f32 1.0, %v4568_v1 }
0x2777   :  { %2676 = vrot.lane.b32.xlu1 %v2674_v2, %s4593_s18  ;;  %v2763_v43 = vmul.f32 %v3417_v18, %v2762_v17 }
0x27e9   :  { %v2677_v3 = vpop.permute.xlu1 %2676 }
0x27ea   :  { %4103 = vmatmul.mubr.msk.f32.vlgmr.msra.gmra.mrb[32].mxu1 %vm367_vm2, %v2677_v3 }
0x27eb   :  { %4435 = vmatpush3.bf16.msra.mxu1 %v4864_v23  ;;  %4121 = vmatprep.mubr.msk.f32.mxu1 %vm4591_vm3, %v4592_v29 }
0x27ec   :  { %4436 = vmatprep.subr.bf16.mxu1 %v4590_v9 }
0x27ef   :  { %4438 = vmatpush3.bf16.msra.mxu1 %v4870_v25 }
0x27f0   :  { %4439 = vmatprep.subr.bf16.mxu1 %v4590_v9 }
0x27f3   :  { %4441 = vmatpush3.bf16.msra.mxu1 %v4881_v30 }
0x27f4   :  { %4442 = vmatprep.subr.bf16.mxu1 %v4590_v9 }
0x27f7   :  { %4444 = vmatpush3.bf16.msra.mxu1 %v4891_v35 }
0x27f8   :  { %4463 = vmatprep.subr.bf16.mxu1 %v4590_v9 }
0x28bd   :  { %v2746_v15 = vpop.f32.mrb[32].mxu1 }
0x28be   :  { %2751 = vrot.lane.b32.xlu0 %v2746_v15, %s4594_s19  ;;  %v4104_v5 = vpop.f32.mrb[33].mxu1 }
0x28c2   :  { %2570 = vrot.lane.b32.xlu0 %v5383_v47, %s4595_s10 }
0x2930   :  { %v2752_v7 = vpop.permute.xlu0 %2751 }
0x2931   :  { %v2754_v54 = vadd.f32 %v2752_v7, %v2667_v46 }
0x2933   :  { %4569 = vtanh.f32 %v2754_v54 }
0x2934   :  { %v2571_v8 = vpop.permute.xlu0 %2570 }
0x2935   :  { %v2573_v55 = vsel %vm367_vm2, %v5342_v33, %v2571_v8 }
0x2936   :  { %3415 = vst.msk [vmem:[%s5540_s11 + $0x28] sm:$0xff] %vm369_vm4, %v2573_v55 }
0x293d   :  { %v4570_v57 = vpop.eup %4569 }
0x293e   :  { %2758 = vrot.lane.b32.xlu1 %v4570_v57, %s4594_s19  ;;  %v3431_v57 = vld [vmem:[%s5534_s2 + $0x160] sm:$0xff] }
0x29b0   :  { %v2759_v51 = vpop.permute.xlu1 %2758 }
0x29b1   :  { %v2761_v21 = vmul.f32 %v2759_v51, %v2756_v19 }
0x29b3   :  { %v5425_v50 = vadd.f32 %v2763_v43, %v2761_v21 }
0x29b5   :  { %v2765_v52 = vmul.f32 %v3418_v22, %v5425_v50 }
0x29b7   :  { %v2766_v24 = vsel %vm367_vm2, %v2765_v52, %v2571_v8 }
0x29b8   :  { %4122 = vmatmul.mubr.msk.f32.vlgmr.msra.gmra.mrb[34].mxu1 %vm369_vm4, %v2766_v24 }
0x29b9   :  { %4465 = vmatpush3.bf16.msra.mxu1 %v4772_v36  ;;  %4162 = vmatprep.mubr.msk.f32.mxu1 %vm4591_vm3, %v4592_v29 }
0x29ba   :  { %4466 = vmatprep.subr.bf16.mxu1 %v4590_v9 }
0x29bd   :  { %4468 = vmatpush3.bf16.msra.mxu1 %v4786_v40 }
0x29be   :  { %4469 = vmatprep.subr.bf16.mxu1 %v4590_v9 }
0x2a8b   :  { %v2836_v33 = vpop.f32.mrb[34].mxu1 }
0x2a8c   :  { %v2840_v44 = vadd.f32 %v2836_v33, %v4836_v62  ;;  %v4123_v26 = vpop.f32.mrb[35].mxu1 }
0x2a8e   :  { %v3426_v28 = vmul.f32 -1.442695, %v2840_v44 }
0x2a90   :  { %4571 = vpow2.f32 %v3426_v28 }
0x2a9a   :  { %v4572_v56 = vpop.eup %4571 }
0x2a9b   :  { %v2844_v13 = vadd.f32 1.0, %v4572_v56 }
0x2a9d   :  { %4573 = vrcp.f32 %v2844_v13 }
0x2aa7   :  { %v4574_v34 = vpop.eup %4573 }
0x2aa8   :  { %v2847_v36 = vmul.f32 %v4574_v34, %v2571_v8  ;;  %v2932_v39 = vsub.f32 1.0, %v4574_v34 }
0x2aaa   :  { %2849 = vrot.lane.b32.xlu1 %v2847_v36, %s4593_s18 }
0x2b1c   :  { %v2850_v4 = vpop.permute.xlu1 %2849 }
0x2b1d   :  { %4133 = vmatmul.mubr.msk.f32.vlgmr.msra.gmra.mrb[34].mxu0 %vm367_vm2, %v2850_v4  ;;  %v3432_v4 = vld [vmem:[%s5534_s2 + $0x168] sm:$0xff] }
0x2b1e   :  { %4453 = vmatpush3.bf16.msra.mxu0 %v4675_v6  ;;  %4151 = vmatprep.mubr.msk.f32.mxu0 %vm4591_vm3, %v4592_v29 }
0x2b1f   :  { %4454 = vmatprep.subr.bf16.mxu0 %v4590_v9 }
0x2b22   :  { %4456 = vmatpush3.bf16.msra.mxu0 %v4693_v12 }
0x2b23   :  { %4457 = vmatprep.subr.bf16.mxu0 %v4590_v9 }
0x2b26   :  { %4459 = vmatpush3.bf16.msra.mxu0 %v4718_v20  ;;  %v3420_v20 = vld [vmem:[%s5534_s2 + $0x140] sm:$0xff] }
0x2b27   :  { %4460 = vmatprep.subr.bf16.mxu0 %v4590_v9 }
0x2b2a   :  { %4462 = vmatpush3.bf16.msra.mxu0 %v4743_v27  ;;  %v2929_v27 = vmul.f32 %v4574_v34, %v3420_v20  ;;  %v3433_v34 = vld [vmem:[%s5534_s2 + $0x170] sm:$0xff] }
0x2b2b   :  { %4481 = vmatprep.subr.bf16.mxu0 %v4590_v9 }
0x2b2c   :  { %v2930_v38 = vadd.f32 %v3419_v49, %v2929_v27 }
0x2b2e   :  { %v2931_v48 = vmul.f32 %v2930_v38, %v5383_v47  ;;  %v206_v47 = vadd.f32 %v5309_v16, %v4847_v14 }
0x2bf0   :  { %v2919_v40 = vpop.f32.mrb[34].mxu0 }
0x2bf1   :  { %2924 = vrot.lane.b32.xlu0 %v2919_v40, %s4594_s19  ;;  %v4134_v6 = vpop.f32.mrb[35].mxu0 }
0x2bf5   :  { %2961 = vrot.lane.b32.xlu0 %v5425_v50, %s4595_s10 }
0x2c63   :  { %v2925_v62 = vpop.permute.xlu0 %2924 }
0x2c64   :  { %v2927_v37 = vadd.f32 %v2925_v62, %v2840_v44  ;;  %v3434_v62 = vld [vmem:[%s5534_s2 + $0x178] sm:$0xff] }
0x2c66   :  { %4575 = vtanh.f32 %v2927_v37 }
0x2c67   :  { %v2962_v46 = vpop.permute.xlu0 %2961 }
0x2c70   :  { %v4576_v12 = vpop.eup %4575 }
0x2c71   :  { %2934 = vrot.lane.b32.xlu1 %v4576_v12, %s4594_s19 }
0x2ce3   :  { %v2935_v41 = vpop.permute.xlu1 %2934 }
0x2ce4   :  { %v2937_v42 = vmul.f32 %v2935_v41, %v2932_v39 }
0x2ce6   :  { %v2938_v11 = vmul.f32 %v3421_v10, %v2937_v42 }
0x2ce8   :  { %v5466_v32 = vadd.f32 %v2938_v11, %v2931_v48 }
0x2cea   :  { %v2959_v45 = vmul.f32 %v3429_v53, %v5466_v32 }
0x2cec   :  { %v2964_v31 = vsel %vm367_vm2, %v2959_v45, %v2962_v46 }
0x2ced   :  { %4152 = vmatmul.mubr.msk.f32.vlgmr.msra.gmra.mrb[36].mxu0 %vm369_vm4, %v2964_v31 }
0x2cee   :  { %4483 = vmatpush3.bf16.msra.mxu0 %v4922_v61  ;;  %4192 = vmatprep.mubr.msk.f32.mxu0 %vm4591_vm3, %v4592_v29 }
0x2cef   :  { %4484 = vmatprep.subr.bf16.mxu0 %v4590_v9 }
0x2cf2   :  { %4486 = vmatpush3.bf16.msra.mxu0 %v4928_v0 }
0x2dc0   :  { %v3034_v58 = vpop.f32.mrb[36].mxu0 }
0x2dc1   :  { %v3038_v60 = vadd.f32 %v3034_v58, %v206_v47  ;;  %v4153_v63 = vpop.f32.mrb[37].mxu0 }
0x2dc3   :  { %v3436_v1 = vmul.f32 -1.442695, %v3038_v60 }
0x2dc5   :  { %4577 = vpow2.f32 %v3436_v1 }
0x2dcf   :  { %v4578_v2 = vpop.eup %4577 }
0x2dd0   :  { %v3042_v3 = vadd.f32 1.0, %v4578_v2 }
0x2dd2   :  { %4579 = vrcp.f32 %v3042_v3 }
0x2ddc   :  { %v4580_v15 = vpop.eup %4579 }
0x2ddd   :  { %v3045_v61 = vmul.f32 %v4580_v15, %v2962_v46  ;;  %v3127_v7 = vsub.f32 1.0, %v4580_v15 }
0x2ddf   :  { %3047 = vrot.lane.b32.xlu1 %v3045_v61, %s4593_s18 }
0x2e51   :  { %v3048_v5 = vpop.permute.xlu1 %3047 }
0x2e52   :  { %4163 = vmatmul.mubr.msk.f32.vlgmr.msra.gmra.mrb[36].mxu1 %vm367_vm2, %v3048_v5 }
0x2e53   :  { %4471 = vmatpush3.bf16.msra.mxu1 %v4864_v23  ;;  %4181 = vmatprep.mubr.msk.f32.mxu1 %vm4591_vm3, %v4592_v29 }
0x2e54   :  { %4472 = vmatprep.subr.bf16.mxu1 %v4590_v9 }
0x2e57   :  { %4474 = vmatpush3.bf16.msra.mxu1 %v4870_v25 }
0x2e58   :  { %4475 = vmatprep.subr.bf16.mxu1 %v4590_v9 }
0x2e5b   :  { %4477 = vmatpush3.bf16.msra.mxu1 %v4881_v30  ;;  %v3133_v30 = vmul.f32 %v4580_v15, %v5425_v50 }
0x2e5c   :  { %4478 = vmatprep.subr.bf16.mxu1 %v4590_v9 }
0x2e5f   :  { %4480 = vmatpush3.bf16.msra.mxu1 %v4891_v35  ;;  %v3430_v35 = vld [vmem:[%s5534_s2 + $0x158] sm:$0xff] }
0x2e60   :  { %v3134_v8 = vmul.f32 %v3430_v35, %v3133_v30 }
0x2f25   :  { %v3117_v14 = vpop.f32.mrb[36].mxu1 }
0x2f26   :  { %3122 = vrot.lane.b32.xlu0 %v3117_v14, %s4594_s19  ;;  %v4164_v0 = vpop.f32.mrb[37].mxu1 }
0x2f2a   :  { %2941 = vrot.lane.b32.xlu0 %v5466_v32, %s4595_s10 }
0x2f98   :  { %v3123_v29 = vpop.permute.xlu0 %3122 }
0x2f99   :  { %v3125_v23 = vadd.f32 %v3123_v29, %v3038_v60 }
0x2f9b   :  { %4581 = vtanh.f32 %v3125_v23 }
0x2f9c   :  { %v2942_v16 = vpop.permute.xlu0 %2941 }
0x2f9d   :  { %v2944_v25 = vsel %vm367_vm2, %v5425_v50, %v2942_v16 }
0x2f9e   :  { %3428 = vst.msk [vmem:[%s5540_s11 + $0x30] sm:$0xff] %vm369_vm4, %v2944_v25 }
0x2fa5   :  { %v4582_v9 = vpop.eup %4581 }
0x2fa6   :  { %3129 = vrot.lane.b32.xlu1 %v4582_v9, %s4594_s19 }
0x3018   :  { %v3130_v54 = vpop.permute.xlu1 %3129 }
0x3019   :  { %v3132_v55 = vmul.f32 %v3130_v54, %v3127_v7 }
0x301b   :  { %v3135_v17 = vadd.f32 %v3134_v8, %v3132_v55 }
0x301d   :  { %v3136_v18 = vmul.f32 %v3431_v57, %v3135_v17 }
0x301f   :  { %v3137_v19 = vsel %vm367_vm2, %v3136_v18, %v2942_v16 }
0x3020   :  { %4182 = vmatmul.mubr.msk.f32.vlgmr.msra.gmra.mrb[38].mxu1 %vm369_vm4, %v3137_v19 }
0x30f3   :  { %v3207_v51 = vpop.f32.mrb[38].mxu1 }
0x30f4   :  { %v3211_v43 = vadd.f32 %v3207_v51, %v4832_v59  ;;  %v4183_v21 = vpop.f32.mrb[39].mxu1 }
0x30f6   :  { %v3439_v22 = vmul.f32 -1.442695, %v3211_v43 }
0x30f8   :  { %4583 = vpow2.f32 %v3439_v22 }
0x3102   :  { %v4584_v50 = vpop.eup %4583 }
0x3103   :  { %v3215_v52 = vadd.f32 1.0, %v4584_v50 }
0x3105   :  { %4585 = vrcp.f32 %v3215_v52 }
0x310f   :  { %v4586_v24 = vpop.eup %4585 }
0x3110   :  { %v3218_v33 = vmul.f32 %v4586_v24, %v2942_v16  ;;  %v3300_v36 = vmul.f32 %v4586_v24, %v3433_v34  ;;  %v3303_v40 = vsub.f32 1.0, %v4586_v24 }
0x3112   :  { %3220 = vrot.lane.b32.xlu1 %v3218_v33, %s4593_s18  ;;  %v3301_v6 = vadd.f32 %v3432_v4, %v3300_v36 }
0x3114   :  { %v3302_v27 = vmul.f32 %v3301_v6, %v5466_v32 }
0x3184   :  { %v3221_v44 = vpop.permute.xlu1 %3220 }
0x3185   :  { %4193 = vmatmul.mubr.msk.f32.vlgmr.msra.gmra.mrb[38].mxu0 %vm367_vm2, %v3221_v44 }
0x3258   :  { %v3290_v26 = vpop.f32.mrb[38].mxu0 }
0x3259   :  { %3295 = vrot.lane.b32.xlu0 %v3290_v26, %s4594_s19  ;;  %v4194_v28 = vpop.f32.mrb[39].mxu0 }
0x32cb   :  { %v3296_v56 = vpop.permute.xlu0 %3295 }
0x32cc   :  { %v3298_v13 = vadd.f32 %v3296_v56, %v3211_v43 }
0x32ce   :  { %4587 = vtanh.f32 %v3298_v13 }
0x32d8   :  { %v4588_v59 = vpop.eup %4587 }
0x32d9   :  { %3305 = vrot.lane.b32.xlu1 %v4588_v59, %s4594_s19 }
0x334b   :  { %v3306_v37 = vpop.permute.xlu1 %3305 }
0x334c   :  { %v3308_v12 = vmul.f32 %v3306_v37, %v3303_v40 }
0x334e   :  { %v3309_v20 = vmul.f32 %v3434_v62, %v3308_v12 }
0x3350   :  { %v3310_v49 = vadd.f32 %v3309_v20, %v3302_v27 }
0x3352   :  { %3312 = vrot.lane.b32.xlu0 %v3310_v49, %s4595_s10 }
0x33c4   :  { %v3313_v38 = vpop.permute.xlu0 %3312 }
0x33c5   :  { %v3315_v39 = vsel %vm367_vm2, %v3135_v17, %v3313_v38 }
0x33c6   :  { %3441 = vst.msk [vmem:[%s5540_s11 + $0x38] sm:$0xff] %vm369_vm4, %v3315_v39 }

</bundles_post_ra>
